<compile_context>
chip_gen: v6e
topology: v6e:2x2x1
jax: 0.10.0
libtpu: 0.0.40
codegen_flags: <defaults>
</compile_context>

<pallas_src>
import numpy as np

import jax
import jax.numpy as jnp
from jax.experimental import pallas as pl
from jax.experimental.pallas import tpu as pltpu

# Architecture constants from the PyTorch module.
LATENT = 32
C0, H0, W0 = 32, 14, 14          # fc output feature map (view(-1, 32, 14, 14))
C1 = 16                          # deconv1 output channels
H1, W1 = 2 * H0, 2 * W0          # after 2x nearest upsample (28, 28)
C2 = 1                           # deconv2 output channels
N0 = H0 * W0                     # 196
N1 = H1 * W1                     # 784


def deconv_to_conv_weight(wt):
    """ConvTranspose2d weight (Cin, Cout, 3, 3), stride=1, pad=1 ->
    equivalent HWIO 3x3 'same' conv weight (3, 3, Cin, Cout)."""
    return jnp.transpose(jnp.flip(wt, axis=(2, 3)), (2, 3, 0, 1))


def _conv3x3_same_nhwc(x, w_hwio, b):
    """Plain-JAX 3x3 'same' conv (used for one-time weight folding + reference)."""
    Bb, H, W, Cin = x.shape
    xp = jnp.pad(x, ((0, 0), (1, 1), (1, 1), (0, 0)))
    acc = jnp.zeros((Bb, H, W, w_hwio.shape[-1]), jnp.float32)
    for ky in range(3):
        for kx in range(3):
            acc = acc + jnp.einsum(
                "bhwc,co->bhwo", xp[:, ky:ky + H, kx:kx + W, :], w_hwio[ky, kx],
                precision=jax.lax.Precision.HIGHEST)
    return acc + b


def prepare_decoder_params(params):
    """One-time weight prep.  Call at parameter-load time, NOT inside the
    per-call jit (per review: avoids re-materializing folded weights every
    forward)."""
    wfc, bfc = params["fc_w"], params["fc_b"]              # (32, 6272), (6272,)
    w1c = deconv_to_conv_weight(params["dc1_w"])           # (3,3,32,16) HWIO
    w2c = deconv_to_conv_weight(params["dc2_w"])           # (3,3,16,1)  HWIO

    # ---- fold fc -> view -> deconv1 into one effective affine map ----------
    wimg = wfc.reshape(LATENT, C0, H0, W0).transpose(0, 2, 3, 1)        # NHWC
    w_big = _conv3x3_same_nhwc(wimg, w1c, 0.0)                          # (32,14,14,16)
    w_big = w_big.transpose(0, 3, 1, 2).reshape(LATENT, C1 * N0)        # (32, 3136)
    bimg = bfc.reshape(1, C0, H0, W0).transpose(0, 2, 3, 1)
    b_big = _conv3x3_same_nhwc(bimg, w1c, params["dc1_b"])              # (1,14,14,16)
    b_big = b_big.transpose(0, 3, 1, 2).reshape(1, C1 * N0)             # (1, 3136)

    # ---- fold 2x nearest upsample -> deconv2 into 4 phase weights ----------
    # out28[2Y+py, 2X+px] = sum_{(ry,rx),ci} wp[py,px,(ry,rx),ci] * h1[ci,Y+ry,X+rx]
    # where original tap offset d collapses onto reduced offset r = (p + d)//2.
    w2_np = np.asarray(w2c)                                             # (3,3,16,1)
    offs = [(dy, dx) for dy in (-1, 0, 1) for dx in (-1, 0, 1)]
    wp = np.zeros((2, 2, 9, C1), np.float32)
    for py in range(2):
        for px in range(2):
            for dy in (-1, 0, 1):
                for dx in (-1, 0, 1):
                    t = offs.index(((py + dy) // 2, (px + dx) // 2))
                    wp[py, px, t, :] += w2_np[dy + 1, dx + 1, :, 0]
    w2_phase = jnp.asarray(wp.reshape(4, 9 * C1))                       # (4, 144)
    b2 = params["dc2_b"].reshape(1, 1)

    return {"w_big": w_big, "b_big": b_big, "w2_phase": w2_phase, "b2": b2}


def _shift_lanes(v, d):
    """out[:, l] = v[:, (l + d) % W]; wrapped lanes are zeroed by the caller's
    input-side masks.  Slice+concat is kept (instead of pltpu.roll) because the
    196-lane (non-128-aligned) rotate has no guaranteed lowering; this is
    VMEM-local work fully hidden under the single weight DMA."""
    w = v.shape[-1]
    d = d % w
    if d == 0:
        return v
    return jnp.concatenate([v[:, d:], v[:, :d]], axis=1)


def _decoder_kernel(x_ref, wbig_ref, bbig_ref, w2p_ref, b2_ref, out_ref):
    """Whole decoder, whole batch, one grid step.  All weights VMEM-resident."""
    B = x_ref.shape[0]

    # ---- fused fc + deconv1 (+bias) for the whole batch, then ReLU ---------
    f = jnp.dot(x_ref[...], wbig_ref[...],
                preferred_element_type=jnp.float32)          # (B, C1*N0)
    f = jnp.maximum(f + bbig_ref[...], 0.0)

    # ---- tap validity masks from iota (no DMA'd masks) ---------------------
    lane = jax.lax.broadcasted_iota(jnp.int32, (1, N0), 1)   # flat n = y*14 + x
    yy = jnp.zeros_like(lane)
    for k in range(1, H0):                                   # y = n // 14, no vector int div
        yy = yy + (lane >= k * W0).astype(jnp.int32)
    xx = lane - W0 * yy                                      # x = n % 14
    masks = []
    for dy in (-1, 0, 1):
        for dx in (-1, 0, 1):
            ok = ((yy + dy >= 0) & (yy + dy < H0) &
                  (xx + dx >= 0) & (xx + dx < W0))
            masks.append(ok.astype(jnp.float32))             # (1, N0)

    # ---- per batch element: regroup, then fused upsample+deconv2 -----------
    for b in range(B):
        fb = f[b:b + 1, :]                                   # (1, C1*N0)
        h = jnp.concatenate(                                 # channel-major (C1, N0)
            [fb[:, c * N0:(c + 1) * N0] for c in range(C1)], axis=0)

        # K-stack the 9 shifted+masked taps -> ONE (4,144)@(144,196) matmul.
        # (Masks must stay on the input side of the stacked contraction.)
        taps = []
        t = 0
        for dy in (-1, 0, 1):
            for dx in (-1, 0, 1):
                taps.append(_shift_lanes(h, dy * W0 + dx) * masks[t])
                t += 1
        src = jnp.concatenate(taps, axis=0)                  # (9*C1, N0)
        ph = jnp.dot(w2p_ref[...], src,
                     preferred_element_type=jnp.float32)     # (4, N0)
        out_ref[b, :, :] = jax.nn.sigmoid(ph + b2_ref[...])


def mnist_decoder_forward(x, prep):
    """Fused decoder forward: x (B, LATENT) -> (B, 1, 28, 28)."""
    B = x.shape[0]
    w_big, b_big = prep["w_big"], prep["b_big"]
    w2_phase, b2 = prep["w2_phase"], prep["b2"]

    flops = 2 * B * (LATENT * C1 * N0 + 4 * 9 * C1 * N0)
    bytes_accessed = 4 * (int(x.size) + int(w_big.size) + int(b_big.size)
                          + int(w2_phase.size) + int(b2.size) + B * 4 * N0)

    out = pl.pallas_call(
        _decoder_kernel,
        out_shape=jax.ShapeDtypeStruct((B, 4, N0), jnp.float32),
        grid=(1,),                                           # batch folded: weights DMA'd once
        in_specs=[
            pl.BlockSpec((B, LATENT), lambda i: (0, 0)),         # x
            pl.BlockSpec((LATENT, C1 * N0), lambda i: (0, 0)),   # fused fc∘conv1 weight
            pl.BlockSpec((1, C1 * N0), lambda i: (0, 0)),        # fused bias
            pl.BlockSpec((4, 9 * C1), lambda i: (0, 0)),         # 4-phase conv2 weights
            pl.BlockSpec((1, 1), lambda i: (0, 0)),              # conv2 bias
        ],
        out_specs=pl.BlockSpec((B, 4, N0), lambda i: (0, 0, 0)),
        compiler_params=pltpu.CompilerParams(
            dimension_semantics=("arbitrary",)),
        cost_estimate=pl.CostEstimate(
            flops=int(flops), transcendentals=int(B * 4 * N0),
            bytes_accessed=int(bytes_accessed)),
    )(x, w_big, b_big, w2_phase, b2)

    # Interleave the 4 output phases into the 28x28 map (tiny, outside kernel).
    o = out.reshape(B, 2, 2, H0, W0)                 # (b, py, px, Y, X)
    o = jnp.transpose(o, (0, 3, 1, 4, 2))            # (b, Y, py, X, px)
    return o.reshape(B, C2, H1, W1)


# ---------------------------------------------------------------------------
# Pure-JAX reference (test harness only) mirroring the PyTorch forward
# op-by-op (fc -> view -> deconv1 -> relu -> upsample -> deconv2 -> sigmoid),
# i.e. it does NOT use the fused weights, so it validates the folding too.
# ---------------------------------------------------------------------------
def mnist_decoder_reference(x, params):
    B = x.shape[0]
    f = jnp.dot(x, params["fc_w"],
                precision=jax.lax.Precision.HIGHEST) + params["fc_b"]
    h = f.reshape(B, C0, H0, W0).transpose(0, 2, 3, 1)              # NHWC
    h = jax.nn.relu(_conv3x3_same_nhwc(
        h, deconv_to_conv_weight(params["dc1_w"]), params["dc1_b"]))
    h = jnp.repeat(jnp.repeat(h, 2, axis=1), 2, axis=2)             # nearest 2x
    h = jax.nn.sigmoid(_conv3x3_same_nhwc(
        h, deconv_to_conv_weight(params["dc2_w"]), params["dc2_b"]))
    return h.transpose(0, 3, 1, 2)                                  # NCHW


# ---------------------------------------------------------------------------
if __name__ == "__main__":
    B = 2
    key = jax.random.PRNGKey(0)
    ks = jax.random.split(key, 7)

    def u(k, shape, fan_in):
        bound = 1.0 / (fan_in ** 0.5)
        return jax.random.uniform(k, shape, jnp.float32, -bound, bound)

    # Deterministic synthetic parameters (PyTorch-shaped ConvTranspose weights;
    # the fc weight is stored transposed, i.e. (in, out), so y = x @ W + b).
    params = {
        "fc_w": u(ks[0], (LATENT, C0 * N0), LATENT),
        "fc_b": u(ks[1], (C0 * N0,), LATENT),
        "dc1_w": u(ks[2], (C0, C1, 3, 3), C0 * 9),     # ConvTranspose2d(32,16,3)
        "dc1_b": u(ks[3], (C1,), C0 * 9),
        "dc2_w": u(ks[4], (C1, C2, 3, 3), C1 * 9),     # ConvTranspose2d(16,1,3)
        "dc2_b": u(ks[5], (C2,), C1 * 9),
    }
    x = jax.random.normal(ks[6], (B, LATENT), jnp.float32)

    prep = prepare_decoder_params(params)              # one-time, outside the jit
    fwd = jax.jit(mnist_decoder_forward)
    y = jax.block_until_ready(fwd(x, prep))

    assert y.shape == (B, 1, 28, 28)
    assert y.dtype == jnp.float32
    assert bool(jnp.all(jnp.isfinite(y)))
    assert bool(jnp.all((y >= 0.0) & (y <= 1.0)))      # sigmoid output range

    y_ref = jax.block_until_ready(mnist_decoder_reference(x, params))
    err = float(jnp.max(jnp.abs(y - y_ref)))
    # f32 everywhere; small slack for MXU/fold re-association differences.
    assert err < 5e-4, f"max abs error vs reference: {err}"

    print("KERNEL_OK")
</pallas_src>

<mosaic_0001>
module attributes {stable_mosaic.version = 11 : i64} {
  func.func @_decoder_kernel(%arg0: i32, %arg1: memref<2x32xf32, #tpu.memory_space<vmem>>, %arg2: memref<32x3136xf32, #tpu.memory_space<vmem>>, %arg3: memref<1x3136xf32, #tpu.memory_space<vmem>>, %arg4: memref<4x144xf32, #tpu.memory_space<vmem>>, %arg5: memref<1x1xf32, #tpu.memory_space<vmem>>, %arg6: memref<2x4x196xf32, #tpu.memory_space<vmem>>) attributes {dimension_semantics = [#tpu.dimension_semantics<arbitrary>], iteration_bounds = array<i64: 1>, scalar_prefetch = 0 : i64, scratch_operands = 0 : i64, tpu.core_type = #tpu.core_type<tc>, window_params = [{pipeline_mode = #tpu.pipeline_mode<synchronous>, transform_indices = @transform_0, window_bounds = array<i64: 2, 32>}, {pipeline_mode = #tpu.pipeline_mode<synchronous>, transform_indices = @transform_1, window_bounds = array<i64: 32, 3136>}, {pipeline_mode = #tpu.pipeline_mode<synchronous>, transform_indices = @transform_2, window_bounds = array<i64: 1, 3136>}, {pipeline_mode = #tpu.pipeline_mode<synchronous>, transform_indices = @transform_3, window_bounds = array<i64: 4, 144>}, {pipeline_mode = #tpu.pipeline_mode<synchronous>, transform_indices = @transform_4, window_bounds = array<i64: 1, 1>}, {pipeline_mode = #tpu.pipeline_mode<synchronous>, transform_indices = @transform_5, window_bounds = array<i64: 2, 4, 196>}]} {
    %c0 = arith.constant 0 : index
    %c0_0 = arith.constant 0 : index
    %0 = vector.load %arg1[%c0, %c0_0] : memref<2x32xf32, #tpu.memory_space<vmem>>, vector<2x32xf32>
    %c0_1 = arith.constant 0 : index
    %c0_2 = arith.constant 0 : index
    %1 = vector.load %arg2[%c0_1, %c0_2] : memref<32x3136xf32, #tpu.memory_space<vmem>>, vector<32x3136xf32>
    %cst = arith.constant dense<0.000000e+00> : vector<2x3136xf32>
    %2 = tpu.matmul %0, %1, %cst {dimension_numbers = #tpu.dot_dimension_numbers<[1], [0], [0], [1], [0, 0, 1, 1], [], []>} : vector<2x32xf32>, vector<32x3136xf32>, vector<2x3136xf32> -> vector<2x3136xf32>
    %c0_3 = arith.constant 0 : index
    %c0_4 = arith.constant 0 : index
    %3 = vector.load %arg3[%c0_3, %c0_4] : memref<1x3136xf32, #tpu.memory_space<vmem>>, vector<1x3136xf32>
    %4 = vector.broadcast %3 : vector<1x3136xf32> to vector<2x3136xf32>
    %5 = arith.addf %2, %4 : vector<2x3136xf32>
    %cst_5 = arith.constant 0.000000e+00 : f32
    %6 = vector.broadcast %cst_5 : f32 to vector<2x3136xf32>
    %7 = arith.maximumf %5, %6 : vector<2x3136xf32>
    %8 = tpu.iota {dimensions = array<i32: 1>} : vector<1x196xi32>
    %c0_i32 = arith.constant 0 : i32
    %9 = vector.broadcast %c0_i32 : i32 to vector<1x196xi32>
    %c14_i32 = arith.constant 14 : i32
    %10 = vector.broadcast %c14_i32 : i32 to vector<1x196xi32>
    %11 = arith.cmpi sge, %8, %10 : vector<1x196xi32>
    %12 = arith.extui %11 : vector<1x196xi1> to vector<1x196xi32>
    %13 = arith.addi %9, %12 : vector<1x196xi32>
    %c28_i32 = arith.constant 28 : i32
    %14 = vector.broadcast %c28_i32 : i32 to vector<1x196xi32>
    %15 = arith.cmpi sge, %8, %14 : vector<1x196xi32>
    %16 = arith.extui %15 : vector<1x196xi1> to vector<1x196xi32>
    %17 = arith.addi %13, %16 : vector<1x196xi32>
    %c42_i32 = arith.constant 42 : i32
    %18 = vector.broadcast %c42_i32 : i32 to vector<1x196xi32>
    %19 = arith.cmpi sge, %8, %18 : vector<1x196xi32>
    %20 = arith.extui %19 : vector<1x196xi1> to vector<1x196xi32>
    %21 = arith.addi %17, %20 : vector<1x196xi32>
    %c56_i32 = arith.constant 56 : i32
    %22 = vector.broadcast %c56_i32 : i32 to vector<1x196xi32>
    %23 = arith.cmpi sge, %8, %22 : vector<1x196xi32>
    %24 = arith.extui %23 : vector<1x196xi1> to vector<1x196xi32>
    %25 = arith.addi %21, %24 : vector<1x196xi32>
    %c70_i32 = arith.constant 70 : i32
    %26 = vector.broadcast %c70_i32 : i32 to vector<1x196xi32>
    %27 = arith.cmpi sge, %8, %26 : vector<1x196xi32>
    %28 = arith.extui %27 : vector<1x196xi1> to vector<1x196xi32>
    %29 = arith.addi %25, %28 : vector<1x196xi32>
    %c84_i32 = arith.constant 84 : i32
    %30 = vector.broadcast %c84_i32 : i32 to vector<1x196xi32>
    %31 = arith.cmpi sge, %8, %30 : vector<1x196xi32>
    %32 = arith.extui %31 : vector<1x196xi1> to vector<1x196xi32>
    %33 = arith.addi %29, %32 : vector<1x196xi32>
    %c98_i32 = arith.constant 98 : i32
    %34 = vector.broadcast %c98_i32 : i32 to vector<1x196xi32>
    %35 = arith.cmpi sge, %8, %34 : vector<1x196xi32>
    %36 = arith.extui %35 : vector<1x196xi1> to vector<1x196xi32>
    %37 = arith.addi %33, %36 : vector<1x196xi32>
    %c112_i32 = arith.constant 112 : i32
    %38 = vector.broadcast %c112_i32 : i32 to vector<1x196xi32>
    %39 = arith.cmpi sge, %8, %38 : vector<1x196xi32>
    %40 = arith.extui %39 : vector<1x196xi1> to vector<1x196xi32>
    %41 = arith.addi %37, %40 : vector<1x196xi32>
    %c126_i32 = arith.constant 126 : i32
    %42 = vector.broadcast %c126_i32 : i32 to vector<1x196xi32>
    %43 = arith.cmpi sge, %8, %42 : vector<1x196xi32>
    %44 = arith.extui %43 : vector<1x196xi1> to vector<1x196xi32>
    %45 = arith.addi %41, %44 : vector<1x196xi32>
    %c140_i32 = arith.constant 140 : i32
    %46 = vector.broadcast %c140_i32 : i32 to vector<1x196xi32>
    %47 = arith.cmpi sge, %8, %46 : vector<1x196xi32>
    %48 = arith.extui %47 : vector<1x196xi1> to vector<1x196xi32>
    %49 = arith.addi %45, %48 : vector<1x196xi32>
    %c154_i32 = arith.constant 154 : i32
    %50 = vector.broadcast %c154_i32 : i32 to vector<1x196xi32>
    %51 = arith.cmpi sge, %8, %50 : vector<1x196xi32>
    %52 = arith.extui %51 : vector<1x196xi1> to vector<1x196xi32>
    %53 = arith.addi %49, %52 : vector<1x196xi32>
    %c168_i32 = arith.constant 168 : i32
    %54 = vector.broadcast %c168_i32 : i32 to vector<1x196xi32>
    %55 = arith.cmpi sge, %8, %54 : vector<1x196xi32>
    %56 = arith.extui %55 : vector<1x196xi1> to vector<1x196xi32>
    %57 = arith.addi %53, %56 : vector<1x196xi32>
    %c182_i32 = arith.constant 182 : i32
    %58 = vector.broadcast %c182_i32 : i32 to vector<1x196xi32>
    %59 = arith.cmpi sge, %8, %58 : vector<1x196xi32>
    %60 = arith.extui %59 : vector<1x196xi1> to vector<1x196xi32>
    %61 = arith.addi %57, %60 : vector<1x196xi32>
    %c14_i32_6 = arith.constant 14 : i32
    %62 = vector.broadcast %c14_i32_6 : i32 to vector<1x196xi32>
    %63 = arith.muli %62, %61 : vector<1x196xi32>
    %64 = arith.subi %8, %63 : vector<1x196xi32>
    %c-1_i32 = arith.constant -1 : i32
    %65 = vector.broadcast %c-1_i32 : i32 to vector<1x196xi32>
    %66 = arith.addi %61, %65 : vector<1x196xi32>
    %c0_i32_7 = arith.constant 0 : i32
    %67 = vector.broadcast %c0_i32_7 : i32 to vector<1x196xi32>
    %68 = arith.cmpi sge, %66, %67 : vector<1x196xi32>
    %c-1_i32_8 = arith.constant -1 : i32
    %69 = vector.broadcast %c-1_i32_8 : i32 to vector<1x196xi32>
    %70 = arith.addi %61, %69 : vector<1x196xi32>
    %c14_i32_9 = arith.constant 14 : i32
    %71 = vector.broadcast %c14_i32_9 : i32 to vector<1x196xi32>
    %72 = arith.cmpi slt, %70, %71 : vector<1x196xi32>
    %73 = arith.andi %68, %72 : vector<1x196xi1>
    %c-1_i32_10 = arith.constant -1 : i32
    %74 = vector.broadcast %c-1_i32_10 : i32 to vector<1x196xi32>
    %75 = arith.addi %64, %74 : vector<1x196xi32>
    %c0_i32_11 = arith.constant 0 : i32
    %76 = vector.broadcast %c0_i32_11 : i32 to vector<1x196xi32>
    %77 = arith.cmpi sge, %75, %76 : vector<1x196xi32>
    %78 = arith.andi %73, %77 : vector<1x196xi1>
    %c-1_i32_12 = arith.constant -1 : i32
    %79 = vector.broadcast %c-1_i32_12 : i32 to vector<1x196xi32>
    %80 = arith.addi %64, %79 : vector<1x196xi32>
    %c14_i32_13 = arith.constant 14 : i32
    %81 = vector.broadcast %c14_i32_13 : i32 to vector<1x196xi32>
    %82 = arith.cmpi slt, %80, %81 : vector<1x196xi32>
    %83 = arith.andi %78, %82 : vector<1x196xi1>
    %84 = arith.extui %83 : vector<1x196xi1> to vector<1x196xi32>
    %85 = arith.sitofp %84 : vector<1x196xi32> to vector<1x196xf32>
    %c-1_i32_14 = arith.constant -1 : i32
    %86 = vector.broadcast %c-1_i32_14 : i32 to vector<1x196xi32>
    %87 = arith.addi %61, %86 : vector<1x196xi32>
    %c0_i32_15 = arith.constant 0 : i32
    %88 = vector.broadcast %c0_i32_15 : i32 to vector<1x196xi32>
    %89 = arith.cmpi sge, %87, %88 : vector<1x196xi32>
    %c-1_i32_16 = arith.constant -1 : i32
    %90 = vector.broadcast %c-1_i32_16 : i32 to vector<1x196xi32>
    %91 = arith.addi %61, %90 : vector<1x196xi32>
    %c14_i32_17 = arith.constant 14 : i32
    %92 = vector.broadcast %c14_i32_17 : i32 to vector<1x196xi32>
    %93 = arith.cmpi slt, %91, %92 : vector<1x196xi32>
    %94 = arith.andi %89, %93 : vector<1x196xi1>
    %c0_i32_18 = arith.constant 0 : i32
    %95 = vector.broadcast %c0_i32_18 : i32 to vector<1x196xi32>
    %96 = arith.addi %64, %95 : vector<1x196xi32>
    %c0_i32_19 = arith.constant 0 : i32
    %97 = vector.broadcast %c0_i32_19 : i32 to vector<1x196xi32>
    %98 = arith.cmpi sge, %96, %97 : vector<1x196xi32>
    %99 = arith.andi %94, %98 : vector<1x196xi1>
    %c0_i32_20 = arith.constant 0 : i32
    %100 = vector.broadcast %c0_i32_20 : i32 to vector<1x196xi32>
    %101 = arith.addi %64, %100 : vector<1x196xi32>
    %c14_i32_21 = arith.constant 14 : i32
    %102 = vector.broadcast %c14_i32_21 : i32 to vector<1x196xi32>
    %103 = arith.cmpi slt, %101, %102 : vector<1x196xi32>
    %104 = arith.andi %99, %103 : vector<1x196xi1>
    %105 = arith.extui %104 : vector<1x196xi1> to vector<1x196xi32>
    %106 = arith.sitofp %105 : vector<1x196xi32> to vector<1x196xf32>
    %c-1_i32_22 = arith.constant -1 : i32
    %107 = vector.broadcast %c-1_i32_22 : i32 to vector<1x196xi32>
    %108 = arith.addi %61, %107 : vector<1x196xi32>
    %c0_i32_23 = arith.constant 0 : i32
    %109 = vector.broadcast %c0_i32_23 : i32 to vector<1x196xi32>
    %110 = arith.cmpi sge, %108, %109 : vector<1x196xi32>
    %c-1_i32_24 = arith.constant -1 : i32
    %111 = vector.broadcast %c-1_i32_24 : i32 to vector<1x196xi32>
    %112 = arith.addi %61, %111 : vector<1x196xi32>
    %c14_i32_25 = arith.constant 14 : i32
    %113 = vector.broadcast %c14_i32_25 : i32 to vector<1x196xi32>
    %114 = arith.cmpi slt, %112, %113 : vector<1x196xi32>
    %115 = arith.andi %110, %114 : vector<1x196xi1>
    %c1_i32 = arith.constant 1 : i32
    %116 = vector.broadcast %c1_i32 : i32 to vector<1x196xi32>
    %117 = arith.addi %64, %116 : vector<1x196xi32>
    %c0_i32_26 = arith.constant 0 : i32
    %118 = vector.broadcast %c0_i32_26 : i32 to vector<1x196xi32>
    %119 = arith.cmpi sge, %117, %118 : vector<1x196xi32>
    %120 = arith.andi %115, %119 : vector<1x196xi1>
    %c1_i32_27 = arith.constant 1 : i32
    %121 = vector.broadcast %c1_i32_27 : i32 to vector<1x196xi32>
    %122 = arith.addi %64, %121 : vector<1x196xi32>
    %c14_i32_28 = arith.constant 14 : i32
    %123 = vector.broadcast %c14_i32_28 : i32 to vector<1x196xi32>
    %124 = arith.cmpi slt, %122, %123 : vector<1x196xi32>
    %125 = arith.andi %120, %124 : vector<1x196xi1>
    %126 = arith.extui %125 : vector<1x196xi1> to vector<1x196xi32>
    %127 = arith.sitofp %126 : vector<1x196xi32> to vector<1x196xf32>
    %c0_i32_29 = arith.constant 0 : i32
    %128 = vector.broadcast %c0_i32_29 : i32 to vector<1x196xi32>
    %129 = arith.addi %61, %128 : vector<1x196xi32>
    %c0_i32_30 = arith.constant 0 : i32
    %130 = vector.broadcast %c0_i32_30 : i32 to vector<1x196xi32>
    %131 = arith.cmpi sge, %129, %130 : vector<1x196xi32>
    %c0_i32_31 = arith.constant 0 : i32
    %132 = vector.broadcast %c0_i32_31 : i32 to vector<1x196xi32>
    %133 = arith.addi %61, %132 : vector<1x196xi32>
    %c14_i32_32 = arith.constant 14 : i32
    %134 = vector.broadcast %c14_i32_32 : i32 to vector<1x196xi32>
    %135 = arith.cmpi slt, %133, %134 : vector<1x196xi32>
    %136 = arith.andi %131, %135 : vector<1x196xi1>
    %c-1_i32_33 = arith.constant -1 : i32
    %137 = vector.broadcast %c-1_i32_33 : i32 to vector<1x196xi32>
    %138 = arith.addi %64, %137 : vector<1x196xi32>
    %c0_i32_34 = arith.constant 0 : i32
    %139 = vector.broadcast %c0_i32_34 : i32 to vector<1x196xi32>
    %140 = arith.cmpi sge, %138, %139 : vector<1x196xi32>
    %141 = arith.andi %136, %140 : vector<1x196xi1>
    %c-1_i32_35 = arith.constant -1 : i32
    %142 = vector.broadcast %c-1_i32_35 : i32 to vector<1x196xi32>
    %143 = arith.addi %64, %142 : vector<1x196xi32>
    %c14_i32_36 = arith.constant 14 : i32
    %144 = vector.broadcast %c14_i32_36 : i32 to vector<1x196xi32>
    %145 = arith.cmpi slt, %143, %144 : vector<1x196xi32>
    %146 = arith.andi %141, %145 : vector<1x196xi1>
    %147 = arith.extui %146 : vector<1x196xi1> to vector<1x196xi32>
    %148 = arith.sitofp %147 : vector<1x196xi32> to vector<1x196xf32>
    %c0_i32_37 = arith.constant 0 : i32
    %149 = vector.broadcast %c0_i32_37 : i32 to vector<1x196xi32>
    %150 = arith.addi %61, %149 : vector<1x196xi32>
    %c0_i32_38 = arith.constant 0 : i32
    %151 = vector.broadcast %c0_i32_38 : i32 to vector<1x196xi32>
    %152 = arith.cmpi sge, %150, %151 : vector<1x196xi32>
    %c0_i32_39 = arith.constant 0 : i32
    %153 = vector.broadcast %c0_i32_39 : i32 to vector<1x196xi32>
    %154 = arith.addi %61, %153 : vector<1x196xi32>
    %c14_i32_40 = arith.constant 14 : i32
    %155 = vector.broadcast %c14_i32_40 : i32 to vector<1x196xi32>
    %156 = arith.cmpi slt, %154, %155 : vector<1x196xi32>
    %157 = arith.andi %152, %156 : vector<1x196xi1>
    %c0_i32_41 = arith.constant 0 : i32
    %158 = vector.broadcast %c0_i32_41 : i32 to vector<1x196xi32>
    %159 = arith.addi %64, %158 : vector<1x196xi32>
    %c0_i32_42 = arith.constant 0 : i32
    %160 = vector.broadcast %c0_i32_42 : i32 to vector<1x196xi32>
    %161 = arith.cmpi sge, %159, %160 : vector<1x196xi32>
    %162 = arith.andi %157, %161 : vector<1x196xi1>
    %c0_i32_43 = arith.constant 0 : i32
    %163 = vector.broadcast %c0_i32_43 : i32 to vector<1x196xi32>
    %164 = arith.addi %64, %163 : vector<1x196xi32>
    %c14_i32_44 = arith.constant 14 : i32
    %165 = vector.broadcast %c14_i32_44 : i32 to vector<1x196xi32>
    %166 = arith.cmpi slt, %164, %165 : vector<1x196xi32>
    %167 = arith.andi %162, %166 : vector<1x196xi1>
    %168 = arith.extui %167 : vector<1x196xi1> to vector<1x196xi32>
    %169 = arith.sitofp %168 : vector<1x196xi32> to vector<1x196xf32>
    %c0_i32_45 = arith.constant 0 : i32
    %170 = vector.broadcast %c0_i32_45 : i32 to vector<1x196xi32>
    %171 = arith.addi %61, %170 : vector<1x196xi32>
    %c0_i32_46 = arith.constant 0 : i32
    %172 = vector.broadcast %c0_i32_46 : i32 to vector<1x196xi32>
    %173 = arith.cmpi sge, %171, %172 : vector<1x196xi32>
    %c0_i32_47 = arith.constant 0 : i32
    %174 = vector.broadcast %c0_i32_47 : i32 to vector<1x196xi32>
    %175 = arith.addi %61, %174 : vector<1x196xi32>
    %c14_i32_48 = arith.constant 14 : i32
    %176 = vector.broadcast %c14_i32_48 : i32 to vector<1x196xi32>
    %177 = arith.cmpi slt, %175, %176 : vector<1x196xi32>
    %178 = arith.andi %173, %177 : vector<1x196xi1>
    %c1_i32_49 = arith.constant 1 : i32
    %179 = vector.broadcast %c1_i32_49 : i32 to vector<1x196xi32>
    %180 = arith.addi %64, %179 : vector<1x196xi32>
    %c0_i32_50 = arith.constant 0 : i32
    %181 = vector.broadcast %c0_i32_50 : i32 to vector<1x196xi32>
    %182 = arith.cmpi sge, %180, %181 : vector<1x196xi32>
    %183 = arith.andi %178, %182 : vector<1x196xi1>
    %c1_i32_51 = arith.constant 1 : i32
    %184 = vector.broadcast %c1_i32_51 : i32 to vector<1x196xi32>
    %185 = arith.addi %64, %184 : vector<1x196xi32>
    %c14_i32_52 = arith.constant 14 : i32
    %186 = vector.broadcast %c14_i32_52 : i32 to vector<1x196xi32>
    %187 = arith.cmpi slt, %185, %186 : vector<1x196xi32>
    %188 = arith.andi %183, %187 : vector<1x196xi1>
    %189 = arith.extui %188 : vector<1x196xi1> to vector<1x196xi32>
    %190 = arith.sitofp %189 : vector<1x196xi32> to vector<1x196xf32>
    %c1_i32_53 = arith.constant 1 : i32
    %191 = vector.broadcast %c1_i32_53 : i32 to vector<1x196xi32>
    %192 = arith.addi %61, %191 : vector<1x196xi32>
    %c0_i32_54 = arith.constant 0 : i32
    %193 = vector.broadcast %c0_i32_54 : i32 to vector<1x196xi32>
    %194 = arith.cmpi sge, %192, %193 : vector<1x196xi32>
    %c1_i32_55 = arith.constant 1 : i32
    %195 = vector.broadcast %c1_i32_55 : i32 to vector<1x196xi32>
    %196 = arith.addi %61, %195 : vector<1x196xi32>
    %c14_i32_56 = arith.constant 14 : i32
    %197 = vector.broadcast %c14_i32_56 : i32 to vector<1x196xi32>
    %198 = arith.cmpi slt, %196, %197 : vector<1x196xi32>
    %199 = arith.andi %194, %198 : vector<1x196xi1>
    %c-1_i32_57 = arith.constant -1 : i32
    %200 = vector.broadcast %c-1_i32_57 : i32 to vector<1x196xi32>
    %201 = arith.addi %64, %200 : vector<1x196xi32>
    %c0_i32_58 = arith.constant 0 : i32
    %202 = vector.broadcast %c0_i32_58 : i32 to vector<1x196xi32>
    %203 = arith.cmpi sge, %201, %202 : vector<1x196xi32>
    %204 = arith.andi %199, %203 : vector<1x196xi1>
    %c-1_i32_59 = arith.constant -1 : i32
    %205 = vector.broadcast %c-1_i32_59 : i32 to vector<1x196xi32>
    %206 = arith.addi %64, %205 : vector<1x196xi32>
    %c14_i32_60 = arith.constant 14 : i32
    %207 = vector.broadcast %c14_i32_60 : i32 to vector<1x196xi32>
    %208 = arith.cmpi slt, %206, %207 : vector<1x196xi32>
    %209 = arith.andi %204, %208 : vector<1x196xi1>
    %210 = arith.extui %209 : vector<1x196xi1> to vector<1x196xi32>
    %211 = arith.sitofp %210 : vector<1x196xi32> to vector<1x196xf32>
    %c1_i32_61 = arith.constant 1 : i32
    %212 = vector.broadcast %c1_i32_61 : i32 to vector<1x196xi32>
    %213 = arith.addi %61, %212 : vector<1x196xi32>
    %c0_i32_62 = arith.constant 0 : i32
    %214 = vector.broadcast %c0_i32_62 : i32 to vector<1x196xi32>
    %215 = arith.cmpi sge, %213, %214 : vector<1x196xi32>
    %c1_i32_63 = arith.constant 1 : i32
    %216 = vector.broadcast %c1_i32_63 : i32 to vector<1x196xi32>
    %217 = arith.addi %61, %216 : vector<1x196xi32>
    %c14_i32_64 = arith.constant 14 : i32
    %218 = vector.broadcast %c14_i32_64 : i32 to vector<1x196xi32>
    %219 = arith.cmpi slt, %217, %218 : vector<1x196xi32>
    %220 = arith.andi %215, %219 : vector<1x196xi1>
    %c0_i32_65 = arith.constant 0 : i32
    %221 = vector.broadcast %c0_i32_65 : i32 to vector<1x196xi32>
    %222 = arith.addi %64, %221 : vector<1x196xi32>
    %c0_i32_66 = arith.constant 0 : i32
    %223 = vector.broadcast %c0_i32_66 : i32 to vector<1x196xi32>
    %224 = arith.cmpi sge, %222, %223 : vector<1x196xi32>
    %225 = arith.andi %220, %224 : vector<1x196xi1>
    %c0_i32_67 = arith.constant 0 : i32
    %226 = vector.broadcast %c0_i32_67 : i32 to vector<1x196xi32>
    %227 = arith.addi %64, %226 : vector<1x196xi32>
    %c14_i32_68 = arith.constant 14 : i32
    %228 = vector.broadcast %c14_i32_68 : i32 to vector<1x196xi32>
    %229 = arith.cmpi slt, %227, %228 : vector<1x196xi32>
    %230 = arith.andi %225, %229 : vector<1x196xi1>
    %231 = arith.extui %230 : vector<1x196xi1> to vector<1x196xi32>
    %232 = arith.sitofp %231 : vector<1x196xi32> to vector<1x196xf32>
    %c1_i32_69 = arith.constant 1 : i32
    %233 = vector.broadcast %c1_i32_69 : i32 to vector<1x196xi32>
    %234 = arith.addi %61, %233 : vector<1x196xi32>
    %c0_i32_70 = arith.constant 0 : i32
    %235 = vector.broadcast %c0_i32_70 : i32 to vector<1x196xi32>
    %236 = arith.cmpi sge, %234, %235 : vector<1x196xi32>
    %c1_i32_71 = arith.constant 1 : i32
    %237 = vector.broadcast %c1_i32_71 : i32 to vector<1x196xi32>
    %238 = arith.addi %61, %237 : vector<1x196xi32>
    %c14_i32_72 = arith.constant 14 : i32
    %239 = vector.broadcast %c14_i32_72 : i32 to vector<1x196xi32>
    %240 = arith.cmpi slt, %238, %239 : vector<1x196xi32>
    %241 = arith.andi %236, %240 : vector<1x196xi1>
    %c1_i32_73 = arith.constant 1 : i32
    %242 = vector.broadcast %c1_i32_73 : i32 to vector<1x196xi32>
    %243 = arith.addi %64, %242 : vector<1x196xi32>
    %c0_i32_74 = arith.constant 0 : i32
    %244 = vector.broadcast %c0_i32_74 : i32 to vector<1x196xi32>
    %245 = arith.cmpi sge, %243, %244 : vector<1x196xi32>
    %246 = arith.andi %241, %245 : vector<1x196xi1>
    %c1_i32_75 = arith.constant 1 : i32
    %247 = vector.broadcast %c1_i32_75 : i32 to vector<1x196xi32>
    %248 = arith.addi %64, %247 : vector<1x196xi32>
    %c14_i32_76 = arith.constant 14 : i32
    %249 = vector.broadcast %c14_i32_76 : i32 to vector<1x196xi32>
    %250 = arith.cmpi slt, %248, %249 : vector<1x196xi32>
    %251 = arith.andi %246, %250 : vector<1x196xi1>
    %252 = arith.extui %251 : vector<1x196xi1> to vector<1x196xi32>
    %253 = arith.sitofp %252 : vector<1x196xi32> to vector<1x196xf32>
    %254 = vector.extract_strided_slice %7 {offsets = [0, 0], sizes = [1, 3136], strides = [1, 1]} : vector<2x3136xf32> to vector<1x3136xf32>
    %255 = vector.extract_strided_slice %254 {offsets = [0, 0], sizes = [1, 196], strides = [1, 1]} : vector<1x3136xf32> to vector<1x196xf32>
    %256 = vector.extract_strided_slice %254 {offsets = [0, 196], sizes = [1, 196], strides = [1, 1]} : vector<1x3136xf32> to vector<1x196xf32>
    %257 = vector.extract_strided_slice %254 {offsets = [0, 392], sizes = [1, 196], strides = [1, 1]} : vector<1x3136xf32> to vector<1x196xf32>
    %258 = vector.extract_strided_slice %254 {offsets = [0, 588], sizes = [1, 196], strides = [1, 1]} : vector<1x3136xf32> to vector<1x196xf32>
    %259 = vector.extract_strided_slice %254 {offsets = [0, 784], sizes = [1, 196], strides = [1, 1]} : vector<1x3136xf32> to vector<1x196xf32>
    %260 = vector.extract_strided_slice %254 {offsets = [0, 980], sizes = [1, 196], strides = [1, 1]} : vector<1x3136xf32> to vector<1x196xf32>
    %261 = vector.extract_strided_slice %254 {offsets = [0, 1176], sizes = [1, 196], strides = [1, 1]} : vector<1x3136xf32> to vector<1x196xf32>
    %262 = vector.extract_strided_slice %254 {offsets = [0, 1372], sizes = [1, 196], strides = [1, 1]} : vector<1x3136xf32> to vector<1x196xf32>
    %263 = vector.extract_strided_slice %254 {offsets = [0, 1568], sizes = [1, 196], strides = [1, 1]} : vector<1x3136xf32> to vector<1x196xf32>
    %264 = vector.extract_strided_slice %254 {offsets = [0, 1764], sizes = [1, 196], strides = [1, 1]} : vector<1x3136xf32> to vector<1x196xf32>
    %265 = vector.extract_strided_slice %254 {offsets = [0, 1960], sizes = [1, 196], strides = [1, 1]} : vector<1x3136xf32> to vector<1x196xf32>
    %266 = vector.extract_strided_slice %254 {offsets = [0, 2156], sizes = [1, 196], strides = [1, 1]} : vector<1x3136xf32> to vector<1x196xf32>
    %267 = vector.extract_strided_slice %254 {offsets = [0, 2352], sizes = [1, 196], strides = [1, 1]} : vector<1x3136xf32> to vector<1x196xf32>
    %268 = vector.extract_strided_slice %254 {offsets = [0, 2548], sizes = [1, 196], strides = [1, 1]} : vector<1x3136xf32> to vector<1x196xf32>
    %269 = vector.extract_strided_slice %254 {offsets = [0, 2744], sizes = [1, 196], strides = [1, 1]} : vector<1x3136xf32> to vector<1x196xf32>
    %270 = vector.extract_strided_slice %254 {offsets = [0, 2940], sizes = [1, 196], strides = [1, 1]} : vector<1x3136xf32> to vector<1x196xf32>
    %271 = tpu.concatenate %255, %256, %257, %258, %259, %260, %261, %262, %263, %264, %265, %266, %267, %268, %269, %270 in 0 : vector<1x196xf32>, vector<1x196xf32>, vector<1x196xf32>, vector<1x196xf32>, vector<1x196xf32>, vector<1x196xf32>, vector<1x196xf32>, vector<1x196xf32>, vector<1x196xf32>, vector<1x196xf32>, vector<1x196xf32>, vector<1x196xf32>, vector<1x196xf32>, vector<1x196xf32>, vector<1x196xf32>, vector<1x196xf32> -> vector<16x196xf32>
    %272 = vector.extract_strided_slice %271 {offsets = [0, 181], sizes = [16, 15], strides = [1, 1]} : vector<16x196xf32> to vector<16x15xf32>
    %273 = vector.extract_strided_slice %271 {offsets = [0, 0], sizes = [16, 181], strides = [1, 1]} : vector<16x196xf32> to vector<16x181xf32>
    %274 = tpu.concatenate %272, %273 in 1 : vector<16x15xf32>, vector<16x181xf32> -> vector<16x196xf32>
    %275 = vector.broadcast %85 : vector<1x196xf32> to vector<16x196xf32>
    %276 = arith.mulf %274, %275 : vector<16x196xf32>
    %277 = vector.extract_strided_slice %271 {offsets = [0, 182], sizes = [16, 14], strides = [1, 1]} : vector<16x196xf32> to vector<16x14xf32>
    %278 = vector.extract_strided_slice %271 {offsets = [0, 0], sizes = [16, 182], strides = [1, 1]} : vector<16x196xf32> to vector<16x182xf32>
    %279 = tpu.concatenate %277, %278 in 1 : vector<16x14xf32>, vector<16x182xf32> -> vector<16x196xf32>
    %280 = vector.broadcast %106 : vector<1x196xf32> to vector<16x196xf32>
    %281 = arith.mulf %279, %280 : vector<16x196xf32>
    %282 = vector.extract_strided_slice %271 {offsets = [0, 183], sizes = [16, 13], strides = [1, 1]} : vector<16x196xf32> to vector<16x13xf32>
    %283 = vector.extract_strided_slice %271 {offsets = [0, 0], sizes = [16, 183], strides = [1, 1]} : vector<16x196xf32> to vector<16x183xf32>
    %284 = tpu.concatenate %282, %283 in 1 : vector<16x13xf32>, vector<16x183xf32> -> vector<16x196xf32>
    %285 = vector.broadcast %127 : vector<1x196xf32> to vector<16x196xf32>
    %286 = arith.mulf %284, %285 : vector<16x196xf32>
    %287 = vector.extract_strided_slice %271 {offsets = [0, 195], sizes = [16, 1], strides = [1, 1]} : vector<16x196xf32> to vector<16x1xf32>
    %288 = vector.extract_strided_slice %271 {offsets = [0, 0], sizes = [16, 195], strides = [1, 1]} : vector<16x196xf32> to vector<16x195xf32>
    %289 = tpu.concatenate %287, %288 in 1 : vector<16x1xf32>, vector<16x195xf32> -> vector<16x196xf32>
    %290 = vector.broadcast %148 : vector<1x196xf32> to vector<16x196xf32>
    %291 = arith.mulf %289, %290 : vector<16x196xf32>
    %292 = vector.broadcast %169 : vector<1x196xf32> to vector<16x196xf32>
    %293 = arith.mulf %271, %292 : vector<16x196xf32>
    %294 = vector.extract_strided_slice %271 {offsets = [0, 1], sizes = [16, 195], strides = [1, 1]} : vector<16x196xf32> to vector<16x195xf32>
    %295 = vector.extract_strided_slice %271 {offsets = [0, 0], sizes = [16, 1], strides = [1, 1]} : vector<16x196xf32> to vector<16x1xf32>
    %296 = tpu.concatenate %294, %295 in 1 : vector<16x195xf32>, vector<16x1xf32> -> vector<16x196xf32>
    %297 = vector.broadcast %190 : vector<1x196xf32> to vector<16x196xf32>
    %298 = arith.mulf %296, %297 : vector<16x196xf32>
    %299 = vector.extract_strided_slice %271 {offsets = [0, 13], sizes = [16, 183], strides = [1, 1]} : vector<16x196xf32> to vector<16x183xf32>
    %300 = vector.extract_strided_slice %271 {offsets = [0, 0], sizes = [16, 13], strides = [1, 1]} : vector<16x196xf32> to vector<16x13xf32>
    %301 = tpu.concatenate %299, %300 in 1 : vector<16x183xf32>, vector<16x13xf32> -> vector<16x196xf32>
    %302 = vector.broadcast %211 : vector<1x196xf32> to vector<16x196xf32>
    %303 = arith.mulf %301, %302 : vector<16x196xf32>
    %304 = vector.extract_strided_slice %271 {offsets = [0, 14], sizes = [16, 182], strides = [1, 1]} : vector<16x196xf32> to vector<16x182xf32>
    %305 = vector.extract_strided_slice %271 {offsets = [0, 0], sizes = [16, 14], strides = [1, 1]} : vector<16x196xf32> to vector<16x14xf32>
    %306 = tpu.concatenate %304, %305 in 1 : vector<16x182xf32>, vector<16x14xf32> -> vector<16x196xf32>
    %307 = vector.broadcast %232 : vector<1x196xf32> to vector<16x196xf32>
    %308 = arith.mulf %306, %307 : vector<16x196xf32>
    %309 = vector.extract_strided_slice %271 {offsets = [0, 15], sizes = [16, 181], strides = [1, 1]} : vector<16x196xf32> to vector<16x181xf32>
    %310 = vector.extract_strided_slice %271 {offsets = [0, 0], sizes = [16, 15], strides = [1, 1]} : vector<16x196xf32> to vector<16x15xf32>
    %311 = tpu.concatenate %309, %310 in 1 : vector<16x181xf32>, vector<16x15xf32> -> vector<16x196xf32>
    %312 = vector.broadcast %253 : vector<1x196xf32> to vector<16x196xf32>
    %313 = arith.mulf %311, %312 : vector<16x196xf32>
    %314 = tpu.concatenate %276, %281, %286, %291, %293, %298, %303, %308, %313 in 0 : vector<16x196xf32>, vector<16x196xf32>, vector<16x196xf32>, vector<16x196xf32>, vector<16x196xf32>, vector<16x196xf32>, vector<16x196xf32>, vector<16x196xf32>, vector<16x196xf32> -> vector<144x196xf32>
    %c0_77 = arith.constant 0 : index
    %c0_78 = arith.constant 0 : index
    %315 = vector.load %arg4[%c0_77, %c0_78] : memref<4x144xf32, #tpu.memory_space<vmem>>, vector<4x144xf32>
    %cst_79 = arith.constant dense<0.000000e+00> : vector<4x196xf32>
    %316 = tpu.matmul %315, %314, %cst_79 {dimension_numbers = #tpu.dot_dimension_numbers<[1], [0], [0], [1], [0, 0, 1, 1], [], []>} : vector<4x144xf32>, vector<144x196xf32>, vector<4x196xf32> -> vector<4x196xf32>
    %c0_80 = arith.constant 0 : index
    %c0_81 = arith.constant 0 : index
    %317 = vector.load %arg5[%c0_80, %c0_81] : memref<1x1xf32, #tpu.memory_space<vmem>>, vector<1x1xf32>
    %318 = vector.broadcast %317 : vector<1x1xf32> to vector<4x196xf32>
    %319 = arith.addf %316, %318 : vector<4x196xf32>
    %320 = arith.negf %319 : vector<4x196xf32>
    %321 = math.exp %320 : vector<4x196xf32>
    %cst_82 = arith.constant 1.000000e+00 : f32
    %322 = vector.broadcast %cst_82 : f32 to vector<4x196xf32>
    %323 = arith.addf %322, %321 : vector<4x196xf32>
    %324 = arith.divf %322, %323 : vector<4x196xf32>
    %c0_83 = arith.constant 0 : index
    %c0_84 = arith.constant 0 : index
    %c0_85 = arith.constant 0 : index
    %325 = vector.load %arg6[%c0_83, %c0_84, %c0_85] : memref<2x4x196xf32, #tpu.memory_space<vmem>>, vector<1x4x196xf32>
    %326 = vector.shape_cast %325 : vector<1x4x196xf32> to vector<4x196xf32>
    %327 = vector.shape_cast %324 : vector<4x196xf32> to vector<1x4x196xf32>
    tpu.vector_store %arg6[%c0_83, %c0_84, %c0_85], %327 {strides = array<i32>} : memref<2x4x196xf32, #tpu.memory_space<vmem>>, vector<1x4x196xf32>,
    %328 = vector.extract_strided_slice %7 {offsets = [1, 0], sizes = [1, 3136], strides = [1, 1]} : vector<2x3136xf32> to vector<1x3136xf32>
    %329 = vector.extract_strided_slice %328 {offsets = [0, 0], sizes = [1, 196], strides = [1, 1]} : vector<1x3136xf32> to vector<1x196xf32>
    %330 = vector.extract_strided_slice %328 {offsets = [0, 196], sizes = [1, 196], strides = [1, 1]} : vector<1x3136xf32> to vector<1x196xf32>
    %331 = vector.extract_strided_slice %328 {offsets = [0, 392], sizes = [1, 196], strides = [1, 1]} : vector<1x3136xf32> to vector<1x196xf32>
    %332 = vector.extract_strided_slice %328 {offsets = [0, 588], sizes = [1, 196], strides = [1, 1]} : vector<1x3136xf32> to vector<1x196xf32>
    %333 = vector.extract_strided_slice %328 {offsets = [0, 784], sizes = [1, 196], strides = [1, 1]} : vector<1x3136xf32> to vector<1x196xf32>
    %334 = vector.extract_strided_slice %328 {offsets = [0, 980], sizes = [1, 196], strides = [1, 1]} : vector<1x3136xf32> to vector<1x196xf32>
    %335 = vector.extract_strided_slice %328 {offsets = [0, 1176], sizes = [1, 196], strides = [1, 1]} : vector<1x3136xf32> to vector<1x196xf32>
    %336 = vector.extract_strided_slice %328 {offsets = [0, 1372], sizes = [1, 196], strides = [1, 1]} : vector<1x3136xf32> to vector<1x196xf32>
    %337 = vector.extract_strided_slice %328 {offsets = [0, 1568], sizes = [1, 196], strides = [1, 1]} : vector<1x3136xf32> to vector<1x196xf32>
    %338 = vector.extract_strided_slice %328 {offsets = [0, 1764], sizes = [1, 196], strides = [1, 1]} : vector<1x3136xf32> to vector<1x196xf32>
    %339 = vector.extract_strided_slice %328 {offsets = [0, 1960], sizes = [1, 196], strides = [1, 1]} : vector<1x3136xf32> to vector<1x196xf32>
    %340 = vector.extract_strided_slice %328 {offsets = [0, 2156], sizes = [1, 196], strides = [1, 1]} : vector<1x3136xf32> to vector<1x196xf32>
    %341 = vector.extract_strided_slice %328 {offsets = [0, 2352], sizes = [1, 196], strides = [1, 1]} : vector<1x3136xf32> to vector<1x196xf32>
    %342 = vector.extract_strided_slice %328 {offsets = [0, 2548], sizes = [1, 196], strides = [1, 1]} : vector<1x3136xf32> to vector<1x196xf32>
    %343 = vector.extract_strided_slice %328 {offsets = [0, 2744], sizes = [1, 196], strides = [1, 1]} : vector<1x3136xf32> to vector<1x196xf32>
    %344 = vector.extract_strided_slice %328 {offsets = [0, 2940], sizes = [1, 196], strides = [1, 1]} : vector<1x3136xf32> to vector<1x196xf32>
    %345 = tpu.concatenate %329, %330, %331, %332, %333, %334, %335, %336, %337, %338, %339, %340, %341, %342, %343, %344 in 0 : vector<1x196xf32>, vector<1x196xf32>, vector<1x196xf32>, vector<1x196xf32>, vector<1x196xf32>, vector<1x196xf32>, vector<1x196xf32>, vector<1x196xf32>, vector<1x196xf32>, vector<1x196xf32>, vector<1x196xf32>, vector<1x196xf32>, vector<1x196xf32>, vector<1x196xf32>, vector<1x196xf32>, vector<1x196xf32> -> vector<16x196xf32>
    %346 = vector.extract_strided_slice %345 {offsets = [0, 181], sizes = [16, 15], strides = [1, 1]} : vector<16x196xf32> to vector<16x15xf32>
    %347 = vector.extract_strided_slice %345 {offsets = [0, 0], sizes = [16, 181], strides = [1, 1]} : vector<16x196xf32> to vector<16x181xf32>
    %348 = tpu.concatenate %346, %347 in 1 : vector<16x15xf32>, vector<16x181xf32> -> vector<16x196xf32>
    %349 = vector.broadcast %85 : vector<1x196xf32> to vector<16x196xf32>
    %350 = arith.mulf %348, %349 : vector<16x196xf32>
    %351 = vector.extract_strided_slice %345 {offsets = [0, 182], sizes = [16, 14], strides = [1, 1]} : vector<16x196xf32> to vector<16x14xf32>
    %352 = vector.extract_strided_slice %345 {offsets = [0, 0], sizes = [16, 182], strides = [1, 1]} : vector<16x196xf32> to vector<16x182xf32>
    %353 = tpu.concatenate %351, %352 in 1 : vector<16x14xf32>, vector<16x182xf32> -> vector<16x196xf32>
    %354 = vector.broadcast %106 : vector<1x196xf32> to vector<16x196xf32>
    %355 = arith.mulf %353, %354 : vector<16x196xf32>
    %356 = vector.extract_strided_slice %345 {offsets = [0, 183], sizes = [16, 13], strides = [1, 1]} : vector<16x196xf32> to vector<16x13xf32>
    %357 = vector.extract_strided_slice %345 {offsets = [0, 0], sizes = [16, 183], strides = [1, 1]} : vector<16x196xf32> to vector<16x183xf32>
    %358 = tpu.concatenate %356, %357 in 1 : vector<16x13xf32>, vector<16x183xf32> -> vector<16x196xf32>
    %359 = vector.broadcast %127 : vector<1x196xf32> to vector<16x196xf32>
    %360 = arith.mulf %358, %359 : vector<16x196xf32>
    %361 = vector.extract_strided_slice %345 {offsets = [0, 195], sizes = [16, 1], strides = [1, 1]} : vector<16x196xf32> to vector<16x1xf32>
    %362 = vector.extract_strided_slice %345 {offsets = [0, 0], sizes = [16, 195], strides = [1, 1]} : vector<16x196xf32> to vector<16x195xf32>
    %363 = tpu.concatenate %361, %362 in 1 : vector<16x1xf32>, vector<16x195xf32> -> vector<16x196xf32>
    %364 = vector.broadcast %148 : vector<1x196xf32> to vector<16x196xf32>
    %365 = arith.mulf %363, %364 : vector<16x196xf32>
    %366 = vector.broadcast %169 : vector<1x196xf32> to vector<16x196xf32>
    %367 = arith.mulf %345, %366 : vector<16x196xf32>
    %368 = vector.extract_strided_slice %345 {offsets = [0, 1], sizes = [16, 195], strides = [1, 1]} : vector<16x196xf32> to vector<16x195xf32>
    %369 = vector.extract_strided_slice %345 {offsets = [0, 0], sizes = [16, 1], strides = [1, 1]} : vector<16x196xf32> to vector<16x1xf32>
    %370 = tpu.concatenate %368, %369 in 1 : vector<16x195xf32>, vector<16x1xf32> -> vector<16x196xf32>
    %371 = vector.broadcast %190 : vector<1x196xf32> to vector<16x196xf32>
    %372 = arith.mulf %370, %371 : vector<16x196xf32>
    %373 = vector.extract_strided_slice %345 {offsets = [0, 13], sizes = [16, 183], strides = [1, 1]} : vector<16x196xf32> to vector<16x183xf32>
    %374 = vector.extract_strided_slice %345 {offsets = [0, 0], sizes = [16, 13], strides = [1, 1]} : vector<16x196xf32> to vector<16x13xf32>
    %375 = tpu.concatenate %373, %374 in 1 : vector<16x183xf32>, vector<16x13xf32> -> vector<16x196xf32>
    %376 = vector.broadcast %211 : vector<1x196xf32> to vector<16x196xf32>
    %377 = arith.mulf %375, %376 : vector<16x196xf32>
    %378 = vector.extract_strided_slice %345 {offsets = [0, 14], sizes = [16, 182], strides = [1, 1]} : vector<16x196xf32> to vector<16x182xf32>
    %379 = vector.extract_strided_slice %345 {offsets = [0, 0], sizes = [16, 14], strides = [1, 1]} : vector<16x196xf32> to vector<16x14xf32>
    %380 = tpu.concatenate %378, %379 in 1 : vector<16x182xf32>, vector<16x14xf32> -> vector<16x196xf32>
    %381 = vector.broadcast %232 : vector<1x196xf32> to vector<16x196xf32>
    %382 = arith.mulf %380, %381 : vector<16x196xf32>
    %383 = vector.extract_strided_slice %345 {offsets = [0, 15], sizes = [16, 181], strides = [1, 1]} : vector<16x196xf32> to vector<16x181xf32>
    %384 = vector.extract_strided_slice %345 {offsets = [0, 0], sizes = [16, 15], strides = [1, 1]} : vector<16x196xf32> to vector<16x15xf32>
    %385 = tpu.concatenate %383, %384 in 1 : vector<16x181xf32>, vector<16x15xf32> -> vector<16x196xf32>
    %386 = vector.broadcast %253 : vector<1x196xf32> to vector<16x196xf32>
    %387 = arith.mulf %385, %386 : vector<16x196xf32>
    %388 = tpu.concatenate %350, %355, %360, %365, %367, %372, %377, %382, %387 in 0 : vector<16x196xf32>, vector<16x196xf32>, vector<16x196xf32>, vector<16x196xf32>, vector<16x196xf32>, vector<16x196xf32>, vector<16x196xf32>, vector<16x196xf32>, vector<16x196xf32> -> vector<144x196xf32>
    %c0_86 = arith.constant 0 : index
    %c0_87 = arith.constant 0 : index
    %389 = vector.load %arg4[%c0_86, %c0_87] : memref<4x144xf32, #tpu.memory_space<vmem>>, vector<4x144xf32>
    %cst_88 = arith.constant dense<0.000000e+00> : vector<4x196xf32>
    %390 = tpu.matmul %389, %388, %cst_88 {dimension_numbers = #tpu.dot_dimension_numbers<[1], [0], [0], [1], [0, 0, 1, 1], [], []>} : vector<4x144xf32>, vector<144x196xf32>, vector<4x196xf32> -> vector<4x196xf32>
    %c0_89 = arith.constant 0 : index
    %c0_90 = arith.constant 0 : index
    %391 = vector.load %arg5[%c0_89, %c0_90] : memref<1x1xf32, #tpu.memory_space<vmem>>, vector<1x1xf32>
    %392 = vector.broadcast %391 : vector<1x1xf32> to vector<4x196xf32>
    %393 = arith.addf %390, %392 : vector<4x196xf32>
    %394 = arith.negf %393 : vector<4x196xf32>
    %395 = math.exp %394 : vector<4x196xf32>
    %cst_91 = arith.constant 1.000000e+00 : f32
    %396 = vector.broadcast %cst_91 : f32 to vector<4x196xf32>
    %397 = arith.addf %396, %395 : vector<4x196xf32>
    %398 = arith.divf %396, %397 : vector<4x196xf32>
    %c1 = arith.constant 1 : index
    %c0_92 = arith.constant 0 : index
    %c0_93 = arith.constant 0 : index
    %399 = vector.load %arg6[%c1, %c0_92, %c0_93] : memref<2x4x196xf32, #tpu.memory_space<vmem>>, vector<1x4x196xf32>
    %400 = vector.shape_cast %399 : vector<1x4x196xf32> to vector<4x196xf32>
    %401 = vector.shape_cast %398 : vector<4x196xf32> to vector<1x4x196xf32>
    tpu.vector_store %arg6[%c1, %c0_92, %c0_93], %401 {strides = array<i32>} : memref<2x4x196xf32, #tpu.memory_space<vmem>>, vector<1x4x196xf32>,
    return
  }
  func.func @transform_0(%arg0: i32) -> (i32, i32) {
    %c0_i32 = arith.constant 0 : i32
    %c0_i32_0 = arith.constant 0 : i32
    %c0_i32_1 = arith.constant 0 : i32
    return %c0_i32, %c0_i32_0 : i32, i32
  }
  func.func @transform_1(%arg0: i32) -> (i32, i32) {
    %c0_i32 = arith.constant 0 : i32
    %c0_i32_0 = arith.constant 0 : i32
    %c0_i32_1 = arith.constant 0 : i32
    return %c0_i32, %c0_i32_0 : i32, i32
  }
  func.func @transform_2(%arg0: i32) -> (i32, i32) {
    %c0_i32 = arith.constant 0 : i32
    %c0_i32_0 = arith.constant 0 : i32
    %c0_i32_1 = arith.constant 0 : i32
    return %c0_i32, %c0_i32_0 : i32, i32
  }
  func.func @transform_3(%arg0: i32) -> (i32, i32) {
    %c0_i32 = arith.constant 0 : i32
    %c0_i32_0 = arith.constant 0 : i32
    %c0_i32_1 = arith.constant 0 : i32
    return %c0_i32, %c0_i32_0 : i32, i32
  }
  func.func @transform_4(%arg0: i32) -> (i32, i32) {
    %c0_i32 = arith.constant 0 : i32
    %c0_i32_0 = arith.constant 0 : i32
    %c0_i32_1 = arith.constant 0 : i32
    return %c0_i32, %c0_i32_0 : i32, i32
  }
  func.func @transform_5(%arg0: i32) -> (i32, i32, i32) {
    %c0_i32 = arith.constant 0 : i32
    %c0_i32_0 = arith.constant 0 : i32
    %c0_i32_1 = arith.constant 0 : i32
    %c0_i32_2 = arith.constant 0 : i32
    return %c0_i32, %c0_i32_0, %c0_i32_1 : i32, i32, i32
  }
}

</mosaic_0001>

<bundles_post_ra>
// kernel: mnist_decoder_forward.1
= control target key start
LH: loop header
LB: loop body
LE: loop exit
PB: predicated region body
PF: predicated region fallthrough
CT: control target
= control target key end

     0   :  { %s4180_s0 = inlined_call_operand.vmem [shape: f32[2,32], index: 0, kind: input, shape index: {}]   ;;  %s4181_s1 = inlined_call_operand.hbm [shape: f32[32,3136], index: 1, kind: input, shape index: {}]   ;;  %s4182_s2 = inlined_call_operand.hbm [shape: f32[1,3136], index: 2, kind: input, shape index: {}]   ;;  %s4183_s3 = inlined_call_operand.hbm [shape: f32[4,144], index: 3, kind: input, shape index: {}]   ;;  %s4184_s4 = inlined_call_operand.<no memory space> [shape: f32[1,1], index: 4, kind: input, shape index: {}]   ;;  %s4185_s5 = inlined_call_operand.vmem [shape: f32[2,4,196], index: 5, kind: output, shape index: {}]  }
   0x1   :  { %v10_v0 = vstv %s4184_s4 }
   0x2   :  { %11 = vst [vmem:[#allocation2] sm:$0x1] %v10_v0 }
   0x3   :  { %12 = vsyncpa [#allocation4], 0 }
   0x4   :  { %13 = vsyncpa [#allocation6], 0  ;;  %s2696_s20 = smov [#allocation5]   ;;  %s2697_s22 = smov [#allocation3]  }
   0x5   :  { %s34_s21 = sshll.u32 %s2696_s20, 4  ;;  %s21_s23 = sshll.u32 %s2697_s22, 4  ;;  %s35_s21 = int_to_ptr.vmem [resolvable:$true] %s34_s21  ;;  %s22_s23 = int_to_ptr.vmem [resolvable:$true] %s21_s23 }
   0x6   :  { %s2640_s24 = scalar_lea.vmem %s35_s21, 400  ;;  %s2644_s25 = scalar_lea.vmem %s35_s21, 416 }
   0x7   :  { %p2641_p0 = scmp.ne.s32.totalorder %s35_s21, %s2640_s24  ;;  %p2645_p1 = scmp.lt.s32.totalorder %s35_s21, %s35_s21 }
   0x8   :  { %p2646_p2 = scmp.lt.s32.totalorder %s2644_s25, %s2640_s24 }
   0xa   :  { %p2647_p3 = por %p2646_p2, %p2645_p1 }
   0xc   :  { %p2648_p4 = pnand %p2647_p3, %p2641_p0 }
   0xe   :  { %2651 = shalt.err (!%p2648_p4)
}
   0xf   :  { %37 = dma.hbm_to_vmem [thread:$0]  %s4182_s2, 400, %s35_s21, [#allocation6]  }
  0x10   :  { %s2660_s4 = scalar_lea.vmem %s22_s23, 12800  ;;  %p2665_p6 = scmp.lt.s32.totalorder %s22_s23, %s22_s23 }
  0x11   :  { %p2661_p5 = scmp.ne.s32.totalorder %s22_s23, %s2660_s4  ;;  %p2666_p7 = scmp.lt.s32.totalorder %s2660_s4, %s2660_s4 }
  0x13   :  { %p2667_p8 = por %p2666_p7, %p2665_p6 }
  0x15   :  { %p2668_p9 = pnand %p2667_p8, %p2661_p5 }
  0x17   :  { %2671 = shalt.err (!%p2668_p9)
}
  0x18   :  { %s2698_s28 = smov 3200   ;;  %s2699_s29 = smov 200  }
  0x19   :  { %27 = dma.hbm_to_vmem [thread:$0]  %s4181_s1, 12800, %s22_s23, [#allocation4], %s2698_s28, %s2698_s28, %s2699_s29  }
  0x1a   :  { %s2700_s7 = smov [#allocation7]  }
  0x1b   :  { %s44_s8 = sshll.u32 %s2700_s7, 4  ;;  %s45_s8 = int_to_ptr.vmem [resolvable:$true] %s44_s8 }
  0x1c   :  { %s2680_s9 = scalar_lea.vmem %s45_s8, 128  ;;  %p2685_p11 = scmp.lt.s32.totalorder %s45_s8, %s45_s8 }
  0x1d   :  { %p2681_p10 = scmp.ne.s32.totalorder %s45_s8, %s2680_s9  ;;  %p2686_p12 = scmp.lt.s32.totalorder %s2680_s9, %s2680_s9 }
  0x1f   :  { %p2687_p13 = por %p2686_p12, %p2685_p11 }
  0x21   :  { %p2688_p0 = pnand %p2687_p13, %p2681_p10 }
  0x23   :  { %2691 = shalt.err (!%p2688_p0)
}
  0x24   :  { %47 = dma.hbm_to_vmem [thread:$0]  %s4183_s3, 128, %s45_s8, [#allocation6]  }
  0x25   :  { %2692 = dma.done.wait [#allocation4], 12800  }
  0x26   :  { %2693 = vsyncadd [#allocation4], 4294954496 }
  0x27   :  { %2694 = dma.done.wait [#allocation6], 528  }
  0x28   :  { %2695 = vsyncadd [#allocation6], 4294966768  ;;  %v4208_v1 = vmov 0.0   ;;  %v136_v2 = vld [vmem:[#allocation3 + $0x260] sm:$0xff]  ;;  %v135_v3 = vld [vmem:[#allocation3 + $0x258] sm:$0xff]  ;;  %vm293_vm0 = vcmask 261120  }
  0x29   :  { %361 = vmatprep.mubr.f32.mxu0 %v4208_v1  ;;  %432 = vmatprep.mubr.f32.mxu1 %v4208_v1  ;;  %v111_v4 = vld [vmem:[#allocation3 + $0x198] sm:$0xff]  ;;  %v138_v5 = vld [vmem:[#allocation3 + $0x270] sm:$0xff]  ;;  %v137_v7 = vld [vmem:[#allocation3 + $0x268] sm:$0xff]  ;;  %vm2702_vm1 = vmmov 0   ;;  %s2704_s11 = smov 120   ;;  %s2705_s12 = smov 52  }
  0x2a   :  { %321 = vmatprep.subr.mxu0 %v136_v2  ;;  %v110_v6 = vld [vmem:[#allocation3 + $0x190] sm:$0xff]  ;;  %392 = vmatprep.subr.mxu1 %v138_v5  ;;  %v113_v9 = vld [vmem:[#allocation3 + $0x1a8] sm:$0xff]  ;;  %v112_v11 = vld [vmem:[#allocation3 + $0x1a0] sm:$0xff]  ;;  %s2706_s13 = smov 112   ;;  %s2707_s14 = smov 44   ;;  %vm1461_vm4 = vcmask 982016  }
  0x2b   :  { %322 = vmatpush1.msra.mxu0 %v135_v3  ;;  %v86_v8 = vld [vmem:[#allocation3 + $0xd0] sm:$0xff]  ;;  %393 = vmatpush1.msra.mxu1 %v137_v7  ;;  %v85_v10 = vld [vmem:[#allocation3 + $0xc8] sm:$0xff]  ;;  %v88_v12 = vld [vmem:[#allocation3 + $0xe0] sm:$0xff]  ;;  %s2709_s15 = smov 104   ;;  %s2710_s16 = smov 36   ;;  %vm1449_vm5 = vcmask 490496  }
  0x2c   :  { %323 = vmatprep.subr.mxu0 %v111_v4  ;;  %394 = vmatprep.subr.mxu1 %v113_v9  ;;  %v61_v13 = vld [vmem:[#allocation3 + $0x8] sm:$0xff]  ;;  %v87_v14 = vld [vmem:[#allocation3 + $0xd8] sm:$0xff]  ;;  %v60_v15 = vld [vmem:[#allocation3] sm:$0xff]  ;;  %s2711_s17 = smov 28   ;;  %s2712_s18 = smov 96   ;;  %vm1476_vm6 = vcmask 424960  }
  0x2d   :  { %324 = vmatpush1.msra.mxu0 %v110_v6  ;;  %395 = vmatpush1.msra.mxu1 %v112_v11  ;;  %v63_v16 = vld [vmem:[#allocation3 + $0x18] sm:$0xff]  ;;  %v140_v18 = vld [vmem:[#allocation3 + $0x280] sm:$0xff]  ;;  %v62_v19 = vld [vmem:[#allocation3 + $0x10] sm:$0xff]  ;;  %s2713_s19 = smov 88   ;;  %s2714_s20 = smov 20   ;;  %vm1488_vm7 = vcmask 916480  }
  0x2e   :  { %325 = vmatprep.subr.mxu0 %v86_v8  ;;  %396 = vmatprep.subr.mxu1 %v88_v12  ;;  %v2782_v17 = vld [vmem:[%s4180_s0] sm:$0x3]  ;;  %v114_v22 = vld [vmem:[#allocation3 + $0x1b0] sm:$0xff]  ;;  %v89_v25 = vld [vmem:[#allocation3 + $0xe8] sm:$0xff]  ;;  %s2703_s0 = smov 60   ;;  %s2715_s21 = smov 80  }
  0x2f   :  { %326 = vmatpush1.msra.mxu0 %v85_v10  ;;  %397 = vmatpush1.msra.mxu1 %v87_v14  ;;  %v139_v20 = vld [vmem:[#allocation3 + $0x278] sm:$0xff]  ;;  %v90_v23 = vld [vmem:[#allocation3 + $0xf0] sm:$0xff]  ;;  %v141_v26 = vld [vmem:[#allocation3 + $0x288] sm:$0xff]  ;;  %s2716_s22 = smov 12   ;;  %s2717_s23 = smov 72   ;;  %vm4186_vm8 = vcmask 359424  }
  0x30   :  { %327 = vmatprep.subr.mxu0 %v61_v13  ;;  %398 = vmatprep.subr.mxu1 %v63_v16  ;;  %v115_v21 = vld [vmem:[#allocation3 + $0x1b8] sm:$0xff]  ;;  %v142_v24 = vld [vmem:[#allocation3 + $0x290] sm:$0xff]  ;;  %v65_v27 = vld [vmem:[#allocation3 + $0x28] sm:$0xff]  ;;  %s2718_s24 = smov 4   ;;  %vm1641_vm10 = vcmask 1040384   ;;  %vm4193_vm11 = vcmask 1041408  }
  0x31   :  { %328 = vmatpush1.msra.mxu0 %v60_v15  ;;  %399 = vmatpush1.msra.mxu1 %v62_v19  ;;  %v117_v28 = vld [vmem:[#allocation3 + $0x1c8] sm:$0xff]  ;;  %v64_v29 = vld [vmem:[#allocation3 + $0x20] sm:$0xff]  ;;  %v91_v32 = vld [vmem:[#allocation3 + $0xf8] sm:$0xff]  ;;  %vm4187_vm12 = vcmask 1042432   ;;  %vm1653_vm13 = vcmask 1044480   ;;  %vm1515_vm14 = vcmask 850944  }
  0x32   :  { %2518 = vmatmul.mubr.msk.f32.vlgmr.msra.gmra.mxu0 %vm293_vm0, %v2782_v17  ;;  %463 = vmatprep.subr.mxu0 %v140_v18  ;;  %v116_v30 = vld [vmem:[#allocation3 + $0x1c0] sm:$0xff]  ;;  %v67_v33 = vld [vmem:[#allocation3 + $0x38] sm:$0xff]  ;;  %v66_v35 = vld [vmem:[#allocation3 + $0x30] sm:$0xff]  ;;  %vm4194_vm15 = vcmask 1043456   ;;  %s2719_s25 = smov 114   ;;  %s2720_s26 = smov 54  }
  0x33   :  { %464 = vmatpush1.msra.mxu0 %v139_v20  ;;  %2519 = vmatmul.mubr.msk.f32.vlgmr.msra.gmra.mxu1 %vm293_vm0, %v2782_v17  ;;  %v92_v31 = vld [vmem:[#allocation3 + $0x100] sm:$0xff]  ;;  %v143_v36 = vld [vmem:[#allocation3 + $0x298] sm:$0xff]  ;;  %v118_v38 = vld [vmem:[#allocation3 + $0x1d0] sm:$0xff]  ;;  %s2721_s27 = smov 115   ;;  %s2722_s4 = smov 127  }
  0x34   :  { %465 = vmatprep.subr.mxu0 %v115_v21  ;;  %503 = vmatprep.mubr.f32.mxu0 %v4208_v1  ;;  %v144_v34 = vld [vmem:[#allocation3 + $0x2a0] sm:$0xff]  ;;  %v119_v37 = vld [vmem:[#allocation3 + $0x1d8] sm:$0xff]  ;;  %v94_v39 = vld [vmem:[#allocation3 + $0x110] sm:$0xff]  ;;  %s2723_s28 = smov 1   ;;  %s2724_s29 = smov 55  }
  0x35   :  { %466 = vmatpush1.msra.mxu0 %v114_v22  ;;  %534 = vmatprep.subr.mxu1 %v142_v24  ;;  %v146_v40 = vld [vmem:[#allocation3 + $0x2b0] sm:$0xff]  ;;  %v93_v41 = vld [vmem:[#allocation3 + $0x108] sm:$0xff]  ;;  %v68_v45 = vld [vmem:[#allocation3 + $0x40] sm:$0xff]  ;;  %s2725_s30 = smov 13   ;;  %s2726_s6 = smov 67  }
  0x36   :  { %467 = vmatprep.subr.mxu0 %v90_v23  ;;  %535 = vmatpush1.msra.mxu1 %v141_v26  ;;  %v145_v42 = vld [vmem:[#allocation3 + $0x2a8] sm:$0xff]  ;;  %v120_v46 = vld [vmem:[#allocation3 + $0x1e0] sm:$0xff]  ;;  %v95_v48 = vld [vmem:[#allocation3 + $0x118] sm:$0xff]  ;;  %s2727_s7 = smov 14   ;;  %s2728_s8 = smov 15  }
  0x37   :  { %468 = vmatpush1.msra.mxu0 %v89_v25  ;;  %536 = vmatprep.subr.mxu1 %v117_v28  ;;  %v69_v43 = vld [vmem:[#allocation3 + $0x48] sm:$0xff]  ;;  %v96_v47 = vld [vmem:[#allocation3 + $0x120] sm:$0xff]  ;;  %v71_v49 = vld [vmem:[#allocation3 + $0x58] sm:$0xff]  ;;  %s2729_s9 = smov 53   ;;  %s2730_s2 = smov 61  }
  0x38   :  { %469 = vmatprep.subr.mxu0 %v65_v27  ;;  %537 = vmatpush1.msra.mxu1 %v116_v30  ;;  %v121_v44 = vld [vmem:[#allocation3 + $0x1e8] sm:$0xff]  ;;  %v148_v50 = vld [vmem:[#allocation3 + $0x2c0] sm:$0xff]  ;;  %v70_v51 = vld [vmem:[#allocation3 + $0x50] sm:$0xff]  ;;  %s2731_s10 = smov 73   ;;  %s2732_s1 = smov 74  }
  0x39   :  { %470 = vmatpush1.msra.mxu0 %v64_v29  ;;  %538 = vmatprep.subr.mxu1 %v92_v31  ;;  %v147_v52 = vld [vmem:[#allocation3 + $0x2b8] sm:$0xff]  ;;  %v150_v53 = vld [vmem:[#allocation3 + $0x2d0] sm:$0xff]  ;;  %v149_v54 = vld [vmem:[#allocation3 + $0x2c8] sm:$0xff]  ;;  %s2733_s3 = smov 75  }
  0x3a   :  { %2520 = vmatmul.mubr.msk.f32.vlgmr.msra.gmra.mxu0 %vm293_vm0, %v2782_v17  ;;  %539 = vmatpush1.msra.mxu1 %v91_v32  ;;  %v123_v55 = vld [vmem:[#allocation3 + $0x1f8] sm:$0xff]  ;;  %v125_v56 = vld [vmem:[#allocation3 + $0x208] sm:$0xff]  ;;  %v122_v57 = vld [vmem:[#allocation3 + $0x1f0] sm:$0xff] }
  0x3b   :  { %574 = vmatprep.mubr.f32.mxu1 %v4208_v1  ;;  %540 = vmatprep.subr.mxu1 %v67_v33  ;;  %v124_v58 = vld [vmem:[#allocation3 + $0x200] sm:$0xff]  ;;  %v98_v60 = vld [vmem:[#allocation3 + $0x130] sm:$0xff]  ;;  %v99_v61 = vld [vmem:[#allocation3 + $0x138] sm:$0xff] }
  0x3c   :  { %605 = vmatprep.subr.mxu0 %v144_v34  ;;  %541 = vmatpush1.msra.mxu1 %v66_v35  ;;  %v100_v59 = vld [vmem:[#allocation3 + $0x140] sm:$0xff]  ;;  %v97_v62 = vld [vmem:[#allocation3 + $0x128] sm:$0xff]  ;;  %v75_v63 = vld [vmem:[#allocation3 + $0x78] sm:$0xff] }
  0x3d   :  { %606 = vmatpush1.msra.mxu0 %v143_v36  ;;  %2521 = vmatmul.mubr.msk.f32.vlgmr.msra.gmra.mxu1 %vm293_vm0, %v2782_v17  ;;  %v73_v0 = vld [vmem:[#allocation3 + $0x68] sm:$0xff]  ;;  %v74_v2 = vld [vmem:[#allocation3 + $0x70] sm:$0xff]  ;;  %v72_v3 = vld [vmem:[#allocation3 + $0x60] sm:$0xff] }
  0x3e   :  { %607 = vmatprep.subr.mxu0 %v119_v37  ;;  %645 = vmatprep.mubr.f32.mxu0 %v4208_v1  ;;  %v152_v4 = vld [vmem:[#allocation3 + $0x2e0] sm:$0xff]  ;;  %v151_v5 = vld [vmem:[#allocation3 + $0x2d8] sm:$0xff]  ;;  %v154_v7 = vld [vmem:[#allocation3 + $0x2f0] sm:$0xff] }
  0x3f   :  { %608 = vmatpush1.msra.mxu0 %v118_v38  ;;  %676 = vmatprep.subr.mxu1 %v146_v40  ;;  %v127_v6 = vld [vmem:[#allocation3 + $0x218] sm:$0xff]  ;;  %v126_v8 = vld [vmem:[#allocation3 + $0x210] sm:$0xff]  ;;  %v153_v9 = vld [vmem:[#allocation3 + $0x2e8] sm:$0xff] }
  0x40   :  { %609 = vmatprep.subr.mxu0 %v94_v39  ;;  %677 = vmatpush1.msra.mxu1 %v145_v42  ;;  %v102_v10 = vld [vmem:[#allocation3 + $0x150] sm:$0xff]  ;;  %v129_v11 = vld [vmem:[#allocation3 + $0x228] sm:$0xff]  ;;  %v128_v13 = vld [vmem:[#allocation3 + $0x220] sm:$0xff] }
  0x41   :  { %610 = vmatpush1.msra.mxu0 %v93_v41  ;;  %678 = vmatprep.subr.mxu1 %v121_v44  ;;  %v101_v12 = vld [vmem:[#allocation3 + $0x148] sm:$0xff]  ;;  %v104_v15 = vld [vmem:[#allocation3 + $0x160] sm:$0xff]  ;;  %v103_v18 = vld [vmem:[#allocation3 + $0x158] sm:$0xff]  ;;  %v168_v41 = vlaneseq }
  0x42   :  { %611 = vmatprep.subr.mxu0 %v69_v43  ;;  %679 = vmatpush1.msra.mxu1 %v120_v46  ;;  %v77_v14 = vld [vmem:[#allocation3 + $0x88] sm:$0xff]  ;;  %v76_v16 = vld [vmem:[#allocation3 + $0x80] sm:$0xff]  ;;  %v79_v19 = vld [vmem:[#allocation3 + $0x98] sm:$0xff] }
  0x43   :  { %612 = vmatpush1.msra.mxu0 %v68_v45  ;;  %680 = vmatprep.subr.mxu1 %v96_v47  ;;  %v78_v20 = vld [vmem:[#allocation3 + $0x90] sm:$0xff]  ;;  %v157_v22 = vld [vmem:[#allocation3 + $0x308] sm:$0xff]  ;;  %v156_v24 = vld [vmem:[#allocation3 + $0x300] sm:$0xff]  ;;  %v169_v42 = vshrl.u32 %v168_v41, 7 }
  0x44   :  { %2522 = vmatmul.mubr.msk.f32.vlgmr.msra.gmra.mxu0 %vm293_vm0, %v2782_v17  ;;  %681 = vmatpush1.msra.mxu1 %v95_v48  ;;  %v158_v21 = vld [vmem:[#allocation3 + $0x310] sm:$0xff]  ;;  %v133_v23 = vld [vmem:[#allocation3 + $0x248] sm:$0xff]  ;;  %v132_v25 = vld [vmem:[#allocation3 + $0x240] sm:$0xff] }
  0x45   :  { %716 = vmatprep.mubr.f32.mxu1 %v4208_v1  ;;  %682 = vmatprep.subr.mxu1 %v71_v49  ;;  %v155_v26 = vld [vmem:[#allocation3 + $0x2f8] sm:$0xff]  ;;  %v108_v27 = vld [vmem:[#allocation3 + $0x180] sm:$0xff]  ;;  %v130_v30 = vld [vmem:[#allocation3 + $0x230] sm:$0xff]  ;;  %v2826_v43 = vsub.s32 0, %v169_v42  ;;  %v2828_v45 = vsub.s32 1, %v169_v42  ;;  %v2830_v46 = vsub.s32 2, %v169_v42 }
  0x46   :  { %747 = vmatprep.subr.mxu0 %v148_v50  ;;  %683 = vmatpush1.msra.mxu1 %v70_v51  ;;  %v131_v28 = vld [vmem:[#allocation3 + $0x238] sm:$0xff]  ;;  %v106_v32 = vld [vmem:[#allocation3 + $0x170] sm:$0xff]  ;;  %v105_v34 = vld [vmem:[#allocation3 + $0x168] sm:$0xff]  ;;  %v2833_v48 = vsub.s32 3, %v169_v42 }
  0x47   :  { %748 = vmatpush1.msra.mxu0 %v147_v52  ;;  %2523 = vmatmul.mubr.msk.f32.vlgmr.msra.gmra.mxu1 %vm293_vm0, %v2782_v17  ;;  %v107_v29 = vld [vmem:[#allocation3 + $0x178] sm:$0xff]  ;;  %v82_v33 = vld [vmem:[#allocation3 + $0xb0] sm:$0xff]  ;;  %v81_v35 = vld [vmem:[#allocation3 + $0xa8] sm:$0xff] }
  0x48   :  { %818 = vmatprep.subr.mxu1 %v150_v53  ;;  %749 = vmatprep.subr.mxu0 %v123_v55  ;;  %v83_v31 = vld [vmem:[#allocation3 + $0xb8] sm:$0xff]  ;;  %v80_v36 = vld [vmem:[#allocation3 + $0xa0] sm:$0xff]  ;;  %v134_v38 = vld [vmem:[#allocation3 + $0x250] sm:$0xff]  ;;  %v2840_v53 = vsub.s32 4, %v169_v42 }
  0x49   :  { %819 = vmatpush1.msra.mxu1 %v149_v54  ;;  %750 = vmatpush1.msra.mxu0 %v122_v57  ;;  %v159_v37 = vld [vmem:[#allocation3 + $0x318] sm:$0xff]  ;;  %v109_v39 = vld [vmem:[#allocation3 + $0x188] sm:$0xff]  ;;  %v84_v40 = vld [vmem:[#allocation3 + $0xc0] sm:$0xff] }
  0x4a   :  { %820 = vmatprep.subr.mxu1 %v125_v56  ;;  %858 = vmatprep.mubr.f32.mxu1 %v4208_v1  ;;  %v160_v44 = vld [vmem:[#allocation5] sm:$0xff] }
  0x4b   :  { %821 = vmatpush1.msra.mxu1 %v124_v58  ;;  %751 = vmatprep.subr.mxu0 %v98_v60  ;;  %v171_v47 = vrot.slane %v160_v44, %v2826_v43  ;;  %v175_v49 = vrot.slane %v160_v44, %v2828_v45  ;;  %v179_v50 = vrot.slane %v160_v44, %v2830_v46  ;;  %v2842_v58 = vsub.s32 5, %v169_v42 }
  0x4c   :  { %822 = vmatprep.subr.mxu1 %v100_v59  ;;  %752 = vmatpush1.msra.mxu0 %v97_v62  ;;  %v183_v52 = vrot.slane %v160_v44, %v2833_v48 }
  0x4d   :  { %823 = vmatpush1.msra.mxu1 %v99_v61  ;;  %753 = vmatprep.subr.mxu0 %v73_v0 }
  0x4e   :  { %824 = vmatprep.subr.mxu1 %v75_v63  ;;  %754 = vmatpush1.msra.mxu0 %v72_v3  ;;  %v187_v63 = vrot.slane %v160_v44, %v2840_v53 }
  0x4f   :  { %825 = vmatpush1.msra.mxu1 %v74_v2  ;;  %787 = vmatprep.mubr.f32.mxu0 %v4208_v1  ;;  %v191_v2 = vrot.slane %v160_v44, %v2842_v58 }
  0x50   :  { %2525 = vmatmul.mubr.msk.f32.vlgmr.msra.gmra.mxu1 %vm293_vm0, %v2782_v17  ;;  %2524 = vmatmul.mubr.msk.f32.vlgmr.msra.gmra.mxu0 %vm293_vm0, %v2782_v17 }
  0x51   :  { %889 = vmatprep.subr.mxu0 %v152_v4  ;;  %929 = vmatprep.mubr.f32.mxu0 %v4208_v1 }
  0x52   :  { %890 = vmatpush1.msra.mxu0 %v151_v5  ;;  %960 = vmatprep.subr.mxu1 %v154_v7 }
  0x53   :  { %891 = vmatprep.subr.mxu0 %v127_v6  ;;  %961 = vmatpush1.msra.mxu1 %v153_v9  ;;  %v2849_v9 = vsub.s32 7, %v169_v42 }
  0x54   :  { %892 = vmatpush1.msra.mxu0 %v126_v8  ;;  %962 = vmatprep.subr.mxu1 %v129_v11 }
  0x55   :  { %893 = vmatprep.subr.mxu0 %v102_v10  ;;  %963 = vmatpush1.msra.mxu1 %v128_v13 }
  0x56   :  { %894 = vmatpush1.msra.mxu0 %v101_v12  ;;  %964 = vmatprep.subr.mxu1 %v104_v15  ;;  %v2852_v15 = vsub.s32 6, %v169_v42 }
  0x57   :  { %895 = vmatprep.subr.mxu0 %v77_v14  ;;  %965 = vmatpush1.msra.mxu1 %v103_v18 }
  0x58   :  { %896 = vmatpush1.msra.mxu0 %v76_v16  ;;  %966 = vmatprep.subr.mxu1 %v79_v19  ;;  %v199_v16 = vrot.slane %v160_v44, %v2849_v9 }
  0x59   :  { %2526 = vmatmul.mubr.msk.f32.vlgmr.msra.gmra.mxu0 %vm293_vm0, %v2782_v17  ;;  %967 = vmatpush1.msra.mxu1 %v78_v20 }
  0x5a   :  { %1000 = vmatprep.mubr.f32.mxu1 %v4208_v1  ;;  %1102 = vmatprep.subr.mxu1 %v158_v21  ;;  %v195_v21 = vrot.slane %v160_v44, %v2852_v15 }
  0x5b   :  { %2527 = vmatmul.mubr.msk.f32.vlgmr.msra.gmra.mxu1 %vm293_vm0, %v2782_v17  ;;  %1031 = vmatprep.subr.mxu0 %v156_v24 }
  0x5c   :  { %1103 = vmatpush1.msra.mxu1 %v157_v22  ;;  %1142 = vmatprep.mubr.f32.mxu1 %v4208_v1 }
  0x5d   :  { %1104 = vmatprep.subr.mxu1 %v133_v23  ;;  %1032 = vmatpush1.msra.mxu0 %v155_v26  ;;  %v2856_v23 = vld [vmem:[#allocation5 + $0x8] sm:$0xff] }
  0x5e   :  { %1105 = vmatpush1.msra.mxu1 %v132_v25  ;;  %1033 = vmatprep.subr.mxu0 %v131_v28  ;;  %v203_v28 = vrot.slane %v2856_v23, %v2826_v43 }
  0x5f   :  { %1106 = vmatprep.subr.mxu1 %v108_v27  ;;  %1034 = vmatpush1.msra.mxu0 %v130_v30 }
  0x60   :  { %1107 = vmatpush1.msra.mxu1 %v107_v29  ;;  %1035 = vmatprep.subr.mxu0 %v106_v32 }
  0x61   :  { %1108 = vmatprep.subr.mxu1 %v83_v31  ;;  %1036 = vmatpush1.msra.mxu0 %v105_v34 }
  0x62   :  { %1109 = vmatpush1.msra.mxu1 %v82_v33  ;;  %1037 = vmatprep.subr.mxu0 %v81_v35 }
  0x63   :  { %2529 = vmatmul.mubr.msk.f32.vlgmr.msra.gmra.mxu1 %vm293_vm0, %v2782_v17  ;;  %1038 = vmatpush1.msra.mxu0 %v80_v36 }
  0x64   :  { %1071 = vmatprep.mubr.f32.mxu0 %v4208_v1  ;;  %2563 = vmatprep.subr.mxu0 %v4208_v1 }
  0x65   :  { %2528 = vmatmul.mubr.msk.f32.vlgmr.msra.gmra.mxu0 %vm293_vm0, %v2782_v17 }
  0x66   :  { %2564 = vmatpush3.msra.mxu0 %v159_v37  ;;  %2571 = vmatprep.mubr.msk.f32.mxu0 %vm2702_vm1, %v4208_v1  ;;  %v211_v37 = vrot.slane %v2856_v23, %v2830_v46 }
  0x67   :  { %2565 = vmatprep.subr.mxu0 %v4208_v1 }
  0x68   :  { %2566 = vmatpush3.msra.mxu0 %v134_v38 }
  0x69   :  { %2567 = vmatprep.subr.mxu0 %v4208_v1 }
  0x6a   :  { %2568 = vmatpush3.msra.mxu0 %v109_v39 }
  0x6b   :  { %2569 = vmatprep.subr.mxu0 %v4208_v1 }
  0x6c   :  { %2570 = vmatpush3.msra.mxu0 %v84_v40 }
  0x6d   :  { %2572 = vmatmul.mubr.msk.f32.vlgmr.msra.gmra.mxu0 %vm293_vm0, %v2782_v17  ;;  %vm1530_vm0 = vcmask 293888  }
  0xf2   :  { %v363_v51 = vpop.f32.mrf.mxu0 }
  0xf3   :  { %v2837_v17 = vadd.f32 %v363_v51, %v171_v47  ;;  %v434_v55 = vpop.f32.mrf.mxu1  ;;  %v2708_v47 = vmov 0   ;;  %v215_v51 = vrot.slane %v2856_v23, %v2833_v48 }
  0xf4   :  { %v365_v54 = vpop.f32.mrf.mxu0  ;;  %v435_v57 = vadd.f32 %v434_v55, %v179_v50  ;;  %2614 = vset.pattern.permute.xlu1 %v2708_v47  ;;  %2613 = vset.pattern.permute.xlu0 %v2708_v47 }
  0xf5   :  { %v366_v56 = vadd.f32 %v365_v54, %v175_v49  ;;  %v436_v59 = vpop.f32.mrf.mxu1 }
  0xf6   :  { %v1221_v61 = vmax.f32 %v435_v57, 0.0  ;;  %v437_v62 = vadd.f32 %v436_v59, %v183_v52  ;;  %v227_v59 = vrot.slane %v2856_v23, %v2852_v15 }
  0xf7   :  { %v2844_v60 = vmax.f32 %v366_v56, 0.0 }
  0xf8   :  { %v1441_v0 = vrot.slane %v1221_v61, 7  ;;  %2017 = vrot.lane.b32.xlu1 %v1221_v61, %s2703_s0  ;;  %v1222_v4 = vmax.f32 %v437_v62, 0.0 }
  0xf9   :  { %2015 = vrot.lane.b32.xlu0 %v2844_v60, %s2703_s0  ;;  %v1440_v12 = vrot.slane %v2844_v60, 7 }
  0xfa   :  { %v505_v3 = vpop.f32.mrf.mxu0  ;;  %v1442_v19 = vrot.slane %v1222_v4, 7  ;;  %v1455_v24 = vrot.slane %v1222_v4, 6 }
  0xfb   :  { %v506_v5 = vadd.f32 %v505_v3, %v187_v63  ;;  %v219_v3 = vrot.slane %v2856_v23, %v2840_v53 }
  0xfc   :  { %v507_v6 = vpop.f32.mrf.mxu0  ;;  %1445 = vrot.lane.b32.xlu1 %v1441_v0, %s2703_s0 }
  0xfd   :  { %v1223_v7 = vmax.f32 %v506_v5, 0.0  ;;  %2019 = vrot.lane.b32.xlu0 %v1222_v4, %s2703_s0  ;;  %v508_v8 = vadd.f32 %v507_v6, %v191_v2  ;;  %v576_v10 = vpop.f32.mrf.mxu1  ;;  %v207_v5 = vrot.slane %v2856_v23, %v2828_v45 }
  0xfe   :  { %v577_v26 = vadd.f32 %v576_v10, %v195_v21 }
  0xff   :  { %v1456_v11 = vrot.slane %v1223_v7, 6  ;;  %v1224_v13 = vmax.f32 %v508_v8, 0.0  ;;  %v2025_v14 = vrot.slane %v1223_v7, 7  ;;  %v578_v18 = vpop.f32.mrf.mxu1  ;;  %v1467_v32 = vrot.slane %v1223_v7, 5 }
 0x100   :  { %v579_v22 = vadd.f32 %v578_v18, %v199_v16  ;;  %v1225_v30 = vmax.f32 %v577_v26, 0.0 }
 0x101   :  { %1459 = vrot.lane.b32.xlu1 %v1456_v11, %s2704_s11  ;;  %1443 = vrot.lane.b32.xlu0 %v1440_v12, %s2703_s0  ;;  %v1468_v20 = vrot.slane %v1224_v13, 5  ;;  %v2033_v25 = vrot.slane %v1224_v13, 6 }
 0x102   :  { %v2859_v27 = vmax.f32 %v579_v22, 0.0  ;;  %v1469_v36 = vrot.slane %v1225_v30, 5  ;;  %v2034_v49 = vrot.slane %v1225_v30, 6  ;;  %v1482_v54 = vrot.slane %v1225_v30, 4 }
 0x104   :  { %v647_v29 = vpop.f32.mrf.mxu0  ;;  %v1483_v31 = vrot.slane %v2859_v27, 4  ;;  %v2045_v35 = vrot.slane %v2859_v27, 5  ;;  %v1494_v6 = vrot.slane %v2859_v27, 3  ;;  %v231_v27 = vrot.slane %v2856_v23, %v2849_v9 }
 0x105   :  { %2028 = vrot.lane.b32.xlu1 %v2025_v14, %s2704_s11  ;;  %1447 = vrot.lane.b32.xlu0 %v1442_v19, %s2703_s0  ;;  %v648_v33 = vadd.f32 %v647_v29, %v203_v28  ;;  %s2734_s0 = smov 113  }
 0x106   :  { %v649_v55 = vpop.f32.mrf.mxu0 }
 0x107   :  { %v1227_v34 = vmax.f32 %v648_v33, 0.0  ;;  %v718_v38 = vpop.f32.mrf.mxu1  ;;  %v650_v13 = vadd.f32 %v649_v55, %v207_v5 }
 0x108   :  { %v719_v40 = vadd.f32 %v718_v38, %v211_v37 }
 0x109   :  { %1472 = vrot.lane.b32.xlu1 %v1468_v20, %s2705_s12  ;;  %1457 = vrot.lane.b32.xlu0 %v1455_v24, %s2704_s11  ;;  %v1495_v39 = vrot.slane %v1227_v34, 3  ;;  %v2053_v42 = vrot.slane %v1227_v34, 4  ;;  %v720_v52 = vpop.f32.mrf.mxu1  ;;  %v223_v20 = vrot.slane %v2856_v23, %v2842_v58  ;;  %v1228_v22 = vmax.f32 %v650_v13, 0.0 }
 0x10a   :  { %v1229_v44 = vmax.f32 %v719_v40, 0.0  ;;  %v721_v57 = vadd.f32 %v720_v52, %v215_v51 }
 0x10b   :  { %v1496_v29 = vrot.slane %v1228_v22, 3  ;;  %v2054_v33 = vrot.slane %v1228_v22, 4 }
 0x10c   :  { %v1510_v50 = vrot.slane %v1229_v44, 2  ;;  %v2065_v56 = vrot.slane %v1229_v44, 3  ;;  %v1230_v0 = vmax.f32 %v721_v57, 0.0 }
 0x10d   :  { %2037 = vrot.lane.b32.xlu1 %v2033_v25, %s2705_s12  ;;  %2026 = vrot.lane.b32.xlu0 %v1442_v19, %s2704_s11  ;;  %v1521_v19 = vrot.slane %v1229_v44, 1 }
 0x10e   :  { %v1522_v8 = vrot.slane %v1230_v0, 1  ;;  %v2073_v40 = vrot.slane %v1230_v0, 2 }
 0x110   :  { %v789_v61 = vpop.f32.mrf.mxu0  ;;  %v860_v62 = vpop.f32.mrf.mxu1 }
 0x111   :  { %1486 = vrot.lane.b32.xlu1 %v1483_v31, %s2706_s13  ;;  %1470 = vrot.lane.b32.xlu0 %v1467_v32, %s2705_s12  ;;  %v2886_v2 = vadd.f32 %v860_v62, %v227_v59  ;;  %v2914_v32 = vld [vmem:[#allocation5 + $0x10] sm:$0xff] }
 0x112   :  { %v791_v63 = vpop.f32.mrf.mxu0  ;;  %v862_v28 = vpop.f32.mrf.mxu1  ;;  %v235_v23 = vrot.slane %v2914_v32, %v2826_v43  ;;  %v243_v43 = vrot.slane %v2914_v32, %v2830_v46 }
 0x113   :  { %v1233_v10 = vmax.f32 %v2886_v2, 0.0  ;;  %v792_v25 = vadd.f32 %v791_v63, %v223_v20  ;;  %v259_v2 = vrot.slane %v2914_v32, %v2852_v15  ;;  %v251_v15 = vrot.slane %v2914_v32, %v2840_v53 }
 0x115   :  { %2048 = vrot.lane.b32.xlu1 %v2045_v35, %s2706_s13  ;;  %1474 = vrot.lane.b32.xlu0 %v1469_v36, %s2705_s12  ;;  %v1547_v16 = vrot.slane %v1233_v10, 7  ;;  %v1232_v30 = vmax.f32 %v792_v25, 0.0  ;;  %v1509_v35 = vrot.slane %v1228_v22, 2  ;;  %v255_v25 = vrot.slane %v2914_v32, %v2842_v58 }
 0x117   :  { %v2085_v62 = vrot.slane %v1232_v30, 1 }
 0x119   :  { %1499 = vrot.lane.b32.xlu1 %v1495_v39, %s2707_s14  ;;  %2035 = vrot.lane.b32.xlu0 %v1456_v11, %s2705_s12  ;;  %v931_v4 = vpop.f32.mrf.mxu0  ;;  %v790_v11 = vadd.f32 %v789_v61, %v219_v3  ;;  %v1546_v39 = vrot.slane %v1232_v30, 7 }
 0x11a   :  { %v932_v37 = vadd.f32 %v931_v4, %v235_v23  ;;  %v239_v4 = vrot.slane %v2914_v32, %v2828_v45  ;;  %v263_v23 = vrot.slane %v2914_v32, %v2849_v9 }
 0x11b   :  { %v2893_v7 = vpop.f32.mrf.mxu0  ;;  %v1231_v18 = vmax.f32 %v790_v11, 0.0  ;;  %v1002_v44 = vpop.f32.mrf.mxu1 }
 0x11c   :  { %v1235_v38 = vmax.f32 %v932_v37, 0.0 }
 0x11d   :  { %2057 = vrot.lane.b32.xlu1 %v2053_v42, %s2707_s14  ;;  %2039 = vrot.lane.b32.xlu0 %v2034_v49, %s2705_s12  ;;  %v1523_v26 = vrot.slane %v1231_v18, 1  ;;  %v1004_v55 = vpop.f32.mrf.mxu1 }
 0x11e   :  { %v1562_v42 = vrot.slane %v1235_v38, 6  ;;  %v2103_v49 = vrot.slane %v1235_v38, 7  ;;  %v1573_v52 = vrot.slane %v1235_v38, 5 }
 0x121   :  { %1513 = vrot.lane.b32.xlu1 %v1510_v50, %s2709_s15  ;;  %1484 = vrot.lane.b32.xlu0 %v1482_v54, %s2706_s13  ;;  %v247_v54 = vrot.slane %v2914_v32, %v2833_v48 }
 0x123   :  { %v1144_v3 = vpop.f32.mrf.mxu1 }
 0x125   :  { %2068 = vrot.lane.b32.xlu1 %v2065_v56, %s2709_s15  ;;  %2046 = vrot.lane.b32.xlu0 %v1469_v36, %s2706_s13  ;;  %v2898_v12 = vpop.f32.mrf.mxu0  ;;  %v2074_v36 = vrot.slane %v1231_v18, 2  ;;  %v1005_v56 = vadd.f32 %v1004_v55, %v247_v54 }
 0x127   :  { %v2900_v14 = vpop.f32.mrf.mxu0  ;;  %v1238_v59 = vmax.f32 %v1005_v56, 0.0 }
 0x129   :  { %2075 = vrot.lane.b32.xlu1 %v1510_v50, %s2710_s16  ;;  %1497 = vrot.lane.b32.xlu0 %v1494_v6, %s2707_s14  ;;  %v1003_v50 = vadd.f32 %v1002_v44, %v243_v43  ;;  %v1589_v63 = vrot.slane %v1238_v59, 4  ;;  %v2123_v0 = vrot.slane %v1238_v59, 5  ;;  %v1600_v5 = vrot.slane %v1238_v59, 3 }
 0x12b   :  { %v1237_v51 = vmax.f32 %v1003_v50, 0.0 }
 0x12d   :  { %1526 = vrot.lane.b32.xlu1 %v1522_v8, %s2710_s16  ;;  %2055 = vrot.lane.b32.xlu0 %v1483_v31, %s2707_s14  ;;  %v2906_v21 = vpop.f32.mrf.mxu0  ;;  %v863_v31 = vadd.f32 %v862_v28, %v231_v27  ;;  %v1575_v46 = vrot.slane %v1237_v51, 5  ;;  %v2112_v61 = vrot.slane %v1237_v51, 6  ;;  %v1588_v6 = vrot.slane %v1237_v51, 4 }
 0x12e   :  { %v1145_v8 = vadd.f32 %v1144_v3, %v259_v2 }
 0x12f   :  { %v2573_v24 = vpop.f32.mrf.mxu0  ;;  %v1234_v34 = vmax.f32 %v863_v31, 0.0 }
 0x130   :  { %v1241_v11 = vmax.f32 %v1145_v8, 0.0 }
 0x131   :  { %1551 = vrot.lane.b32.xlu1 %v1547_v16, %s2711_s17  ;;  %1524 = vrot.lane.b32.xlu0 %v1521_v19, %s2710_s16  ;;  %v1548_v57 = vrot.slane %v1234_v34, 7  ;;  %v1561_v48 = vrot.slane %v1234_v34, 6  ;;  %v1074_v19 = vadd.f32 %v2898_v12, %v251_v15 }
 0x132   :  { %v2143_v24 = vrot.slane %v1241_v11, 3 }
 0x133   :  { %v1239_v53 = vmax.f32 %v1074_v19, 0.0 }
 0x135   :  { %2086 = vrot.lane.b32.xlu1 %v1523_v26, %s2712_s18  ;;  %1501 = vrot.lane.b32.xlu0 %v1496_v29, %s2707_s14  ;;  %v1601_v12 = vrot.slane %v1239_v53, 3 }
 0x139   :  { %2093 = vrot.lane.b32.xlu1 %v1232_v30, %s2711_s17  ;;  %2059 = vrot.lane.b32.xlu0 %v2054_v33, %s2707_s14 }
 0x13d   :  { %2097 = vrot.lane.b32.xlu1 %v1234_v34, %s2711_s17  ;;  %1511 = vrot.lane.b32.xlu0 %v1509_v35, %s2709_s15  ;;  %v2131_v34 = vrot.slane %v1239_v53, 4  ;;  %v1146_v35 = vpop.f32.mrf.mxu1 }
 0x141   :  { %2079 = vrot.lane.b32.xlu1 %v2074_v36, %s2710_s16  ;;  %2066 = vrot.lane.b32.xlu0 %v1496_v29, %s2709_s15  ;;  %v1627_v29 = vrot.slane %v1241_v11, 1  ;;  %v2517_v36 = vld [vmem:[#allocation5 + $0x18] ss:$0 sm:$0xff] }
 0x145   :  { %1549 = vrot.lane.b32.xlu1 %v1546_v39, %s2711_s17  ;;  %2077 = vrot.lane.b32.xlu0 %v2073_v40, %s2710_s16  ;;  %v1147_v40 = vadd.f32 %v1146_v35, %v263_v23 }
 0x147   :  { %v1242_v9 = vmax.f32 %v1147_v40, 0.0 }
 0x149   :  { %1565 = vrot.lane.b32.xlu1 %v1562_v42, %s2713_s19  ;;  %1536 = vrot.lane.b32.xlu0 %v1231_v18, %s2712_s18  ;;  %v1616_v18 = vrot.slane %v1241_v11, 2  ;;  %v2151_v55 = vrot.slane %v1242_v9, 2 }
 0x14d   :  { %2106 = vrot.lane.b32.xlu1 %v2103_v49, %s2713_s19  ;;  %2095 = vrot.lane.b32.xlu0 %v1233_v10, %s2711_s17  ;;  %v934_v10 = vadd.f32 %v2893_v7, %v239_v4 }
 0x14f   :  { %v1236_v13 = vmax.f32 %v934_v10, 0.0 }
 0x151   :  { %1576 = vrot.lane.b32.xlu1 %v1573_v52, %s2714_s20  ;;  %1538 = vrot.lane.b32.xlu0 %v1232_v30, %s2712_s18  ;;  %v1574_v7 = vrot.slane %v1236_v13, 5  ;;  %v1076_v30 = vadd.f32 %v2900_v14, %v255_v25  ;;  %v1628_v52 = vrot.slane %v1242_v9, 1 }
 0x153   :  { %v1240_v58 = vmax.f32 %v1076_v30, 0.0 }
 0x155   :  { %1580 = vrot.lane.b32.xlu1 %v1575_v46, %s2714_s20  ;;  %1528 = vrot.lane.b32.xlu0 %v1523_v26, %s2710_s16  ;;  %v2111_v26 = vrot.slane %v1236_v13, 6  ;;  %v1602_v14 = vrot.slane %v1240_v58, 3  ;;  %v1615_v39 = vrot.slane %v1240_v58, 2  ;;  %v2132_v49 = vrot.slane %v1240_v58, 4 }
 0x159   :  { %2113 = vrot.lane.b32.xlu1 %v1562_v42, %s2714_s20  ;;  %1553 = vrot.lane.b32.xlu0 %v1548_v57, %s2711_s17  ;;  %v1216_v42 = vadd.f32 %v2517_v36, %v2906_v21 }
 0x15b   :  { %v1243_v32 = vmax.f32 %v1216_v42, 0.0 }
 0x15d   :  { %2117 = vrot.lane.b32.xlu1 %v2112_v61, %s2714_s20  ;;  %2088 = vrot.lane.b32.xlu0 %v2085_v62, %s2712_s18  ;;  %v2152_v56 = vrot.slane %v1243_v32, 2 }
 0x161   :  { %1592 = vrot.lane.b32.xlu1 %v1589_v63, %s2715_s21  ;;  %1563 = vrot.lane.b32.xlu0 %v1561_v48, %s2713_s19 }
 0x165   :  { %2126 = vrot.lane.b32.xlu1 %v2123_v0, %s2715_s21  ;;  %2104 = vrot.lane.b32.xlu0 %v1548_v57, %s2713_s19 }
 0x169   :  { %1603 = vrot.lane.b32.xlu1 %v1600_v5, %s2716_s22  ;;  %1590 = vrot.lane.b32.xlu0 %v1588_v6, %s2715_s21  ;;  %v3019_v5 = vand.u32 127, %v168_v41 }
 0x16a   :  { %v2952_v16 = vpop.permute.xlu1 %2017 }
 0x16b   :  { %v2954_v45 = vpop.permute.xlu0 %2015  ;;  %v3022_v6 = vadd.s32 128, %v3019_v5 }
 0x16c   :  { %v2021_v40 = vsel %vm1449_vm5, %v2954_v45, %v2952_v16 }
 0x16d   :  { %2133 = vrot.lane.b32.xlu1 %v1589_v63, %s2716_s22  ;;  %2124 = vrot.lane.b32.xlu0 %v1575_v46, %s2715_s21  ;;  %v1629_v46 = vrot.slane %v1243_v32, 1  ;;  %vm1300_vm2 = vcmp.ge.s32.totalorder %v3022_v6, 140  ;;  %vm1306_vm3 = vcmp.ge.s32.totalorder %v3022_v6, 154  ;;  %vm1312_vm9 = vcmp.ge.s32.totalorder %v3022_v6, 168 }
 0x16e   :  { %v2958_v20 = vpop.permute.xlu1 %1445  ;;  %v1302_v13 = vsel %vm1300_vm2, 1, %v2708_v47  ;;  %v1308_v53 = vsel %vm1306_vm3, 1, %v2708_v47  ;;  %v1314_v23 = vsel %vm1312_vm9, 1, %v2708_v47  ;;  %vm1318_vm1 = vcmp.ge.s32.totalorder %v3022_v6, 182 }
 0x16f   :  { %v2960_v22 = vpop.permute.xlu0 %2019  ;;  %v1304_v19 = vadd.s32 9, %v1302_v13  ;;  %vm4191_vm2 = vcmask 1045504   ;;  %vm4190_vm3 = vcmask 1046528  }
 0x171   :  { %1619 = vrot.lane.b32.xlu1 %v1616_v18, %s2717_s23  ;;  %1578 = vrot.lane.b32.xlu0 %v1574_v7, %s2714_s20  ;;  %v1310_v30 = vadd.s32 %v1308_v53, %v1304_v19 }
 0x173   :  { %v2966_v27 = vpop.permute.xlu1 %1459  ;;  %v2968_v28 = vpop.permute.xlu0 %1443  ;;  %v1316_v32 = vadd.s32 %v1314_v23, %v1310_v30 }
 0x174   :  { %v1450_v7 = vsel %vm1449_vm5, %v2968_v28, %v2958_v20 }
 0x175   :  { %2146 = vrot.lane.b32.xlu1 %v2143_v24, %s2717_s23  ;;  %2115 = vrot.lane.b32.xlu0 %v2111_v26, %s2714_s20  ;;  %v1219_v24 = vmax.f32 %v2837_v17, 0.0 }
 0x177   :  { %v2973_v31 = vpop.permute.xlu1 %2028  ;;  %v2975_v33 = vpop.permute.xlu0 %1447  ;;  %v2011_v36 = vrot.slane %v1219_v24, 1 }
 0x178   :  { %v1451_v30 = vsel %vm1449_vm5, %v2958_v20, %v2975_v33 }
 0x179   :  { %1630 = vrot.lane.b32.xlu1 %v1627_v29, %s2718_s24  ;;  %1605 = vrot.lane.b32.xlu0 %v1601_v12, %s2716_s22  ;;  %v1642_v29 = vsel %vm1641_vm10, %v1219_v24, %v1450_v7  ;;  %v1643_v23 = vsel %vm1641_vm10, %v2844_v60, %v1451_v30 }
 0x17b   :  { %v2981_v37 = vpop.permute.xlu1 %1472  ;;  %v1458_v38 = vpop.permute.xlu0 %1457 }
 0x17c   :  { %v1462_v25 = vsel %vm1461_vm4, %v1458_v38, %v2966_v27 }
 0x17d   :  { %2153 = vrot.lane.b32.xlu1 %v1616_v18, %s2718_s24  ;;  %2135 = vrot.lane.b32.xlu0 %v2131_v34, %s2716_s22  ;;  %v1645_v34 = vsel %vm4193_vm11, %v1642_v29, %v1462_v25 }
 0x17f   :  { %v2986_v43 = vpop.permute.xlu1 %2037  ;;  %v2988_v44 = vpop.permute.xlu0 %2026 }
 0x181   :  { %1607 = vrot.lane.b32.xlu1 %v1602_v14, %s2716_s22  ;;  %1617 = vrot.lane.b32.xlu0 %v1615_v39, %s2717_s23 }
 0x183   :  { %v2992_v50 = vpop.permute.xlu1 %1486  ;;  %v1471_v51 = vpop.permute.xlu0 %1470 }
 0x184   :  { %v1477_v26 = vsel %vm1476_vm6, %v1471_v51, %v2981_v37 }
 0x185   :  { %2137 = vrot.lane.b32.xlu1 %v2132_v49, %s2716_s22  ;;  %2144 = vrot.lane.b32.xlu0 %v1602_v14, %s2717_s23  ;;  %v1648_v35 = vsel %vm4187_vm12, %v1645_v34, %v1477_v26  ;;  %v2030_v49 = vsel %vm1461_vm4, %v2988_v44, %v2973_v31 }
 0x187   :  { %v2996_v21 = vpop.permute.xlu1 %2048  ;;  %v2998_v54 = vpop.permute.xlu0 %1474 }
 0x188   :  { %v1478_v20 = vsel %vm1476_vm6, %v2981_v37, %v2998_v54 }
 0x189   :  { %1634 = vrot.lane.b32.xlu1 %v1629_v46, %s2718_s24  ;;  %1632 = vrot.lane.b32.xlu0 %v1628_v52, %s2718_s24  ;;  %v1320_v46 = vsel %vm1318_vm1, 1, %v2708_v47 }
 0x18a   :  { %v3095_v13 = vadd.s32 %v1320_v46, %v1316_v32 }
 0x18b   :  { %v3002_v57 = vpop.permute.xlu1 %1499  ;;  %v3004_v59 = vpop.permute.xlu0 %2035 }
 0x18c   :  { %v2041_v45 = vsel %vm1476_vm6, %v3004_v59, %v2986_v43  ;;  %v1324_v29 = vmul.u32 14, %v3095_v13  ;;  %vm1376_vm4 = vcmp.ge.s32.totalorder %v3095_v13, 0 }
 0x18d   :  { %2157 = vrot.lane.b32.xlu1 %v2152_v56, %s2718_s24  ;;  %2155 = vrot.lane.b32.xlu0 %v2151_v55, %s2718_s24  ;;  %v2163_v56 = vsel %vm1641_vm10, %v2011_v36, %v2021_v40 }
 0x18e   :  { %v2165_v59 = vsel %vm4193_vm11, %v2163_v56, %v2030_v49 }
 0x18f   :  { %v3008_v61 = vpop.permute.xlu1 %2057  ;;  %v3010_v62 = vpop.permute.xlu0 %2039 }
 0x193   :  { %v3012_v63 = vpop.permute.xlu1 %1513  ;;  %v1485_v48 = vpop.permute.xlu0 %1484 }
 0x194   :  { %v1489_v17 = vsel %vm1488_vm7, %v1485_v48, %v2992_v50 }
 0x195   :  { %v1651_v38 = vsel %vm4194_vm15, %v1648_v35, %v1489_v17 }
 0x197   :  { %v3014_v0 = vpop.permute.xlu1 %2068  ;;  %v2047_v2 = vpop.permute.xlu0 %2046 }
 0x198   :  { %v2050_v48 = vsel %vm1488_vm7, %v2047_v2, %v2996_v21  ;;  %v2167_v2 = vsel %vm4187_vm12, %v2165_v59, %v2041_v45  ;;  %vm1378_vm7 = vcmp.lt.s32.totalorder %v3095_v13, 14 }
 0x199   :  { %v2169_v7 = vsel %vm4194_vm15, %v2167_v2, %v2050_v48  ;;  %vm3147_vm9 = vmand %vm1376_vm4, %vm1378_vm7  ;;  %vm1247_vm7 = vcmp.ge.s32.totalorder %v3019_v5, 14  ;;  %v2022_v2 = vsel %vm1449_vm5, %v2952_v16, %v2960_v22  ;;  %vm4227_vm5 = vcmask 1042432  }
 0x19a   :  { %v1249_v32 = vsel %vm1247_vm7, 1, %v2708_v47  ;;  %vm1275_vm7 = vcmp.ge.s32.totalorder %v3019_v5, 84 }
 0x19b   :  { %v3016_v3 = vpop.permute.xlu1 %2075  ;;  %v1498_v4 = vpop.permute.xlu0 %1497 }
 0x19c   :  { %v1504_v58 = vsel %vm4186_vm8, %v1498_v4, %v3002_v57 }
 0x19d   :  { %v1654_v42 = vsel %vm1653_vm13, %v1651_v38, %v1504_v58 }
 0x19f   :  { %v3024_v8 = vpop.permute.xlu1 %1526  ;;  %v3026_v10 = vpop.permute.xlu0 %2055 }
 0x1a3   :  { %v3029_v11 = vpop.permute.xlu1 %1551  ;;  %v1525_v15 = vpop.permute.xlu0 %1524 }
 0x1a4   :  { %v1531_v51 = vsel %vm1530_vm0, %v1525_v15, %v3024_v8  ;;  %v2061_v15 = vsel %vm4186_vm8, %v3026_v10, %v3008_v61 }
 0x1a5   :  { %v2171_v53 = vsel %vm1653_vm13, %v2169_v7, %v2061_v15  ;;  %v2012_v7 = vrot.slane %v2844_v60, 1 }
 0x1a7   :  { %v3033_v18 = vpop.permute.xlu1 %2086  ;;  %v3035_v41 = vpop.permute.xlu0 %1501 }
 0x1a8   :  { %v1505_v54 = vsel %vm4186_vm8, %v3002_v57, %v3035_v41  ;;  %vm1251_vm8 = vcmp.ge.s32.totalorder %v3019_v5, 28 }
 0x1a9   :  { %v1253_v49 = vsel %vm1251_vm8, 1, %v2708_v47  ;;  %vm1263_vm8 = vcmp.ge.s32.totalorder %v3019_v5, 56 }
 0x1aa   :  { %v1255_v46 = vadd.s32 %v1253_v49, %v1249_v32  ;;  %v1265_v59 = vsel %vm1263_vm8, 1, %v2708_v47  ;;  %vm1287_vm8 = vcmp.ge.s32.totalorder %v3019_v5, 112 }
 0x1ab   :  { %v3047_v12 = vpop.permute.xlu1 %2093  ;;  %v3049_v28 = vpop.permute.xlu0 %2059 }
 0x1af   :  { %v3061_v14 = vpop.permute.xlu1 %2097  ;;  %v1512_v39 = vpop.permute.xlu0 %1511 }
 0x1b0   :  { %v1516_v9 = vsel %vm1515_vm14, %v1512_v39, %v3012_v63 }
 0x1b1   :  { %v1657_v52 = vsel %vm4191_vm2, %v1654_v42, %v1516_v9 }
 0x1b2   :  { %v3080_v55 = vsel %vm4190_vm3, %v1657_v52, %v1531_v51 }
 0x1b3   :  { %v3085_v44 = vpop.permute.xlu1 %2079  ;;  %v2067_v4 = vpop.permute.xlu0 %2066  ;;  %1848 = vrot.lane.b32.xlu0 %v3080_v55, %s2719_s25  ;;  %1863 = vrot.lane.b32.xlu1 %v3080_v55, %s2720_s26 }
 0x1b4   :  { %v2070_v19 = vsel %vm1515_vm14, %v2067_v4, %v3014_v0 }
 0x1b5   :  { %v2173_v10 = vsel %vm4191_vm2, %v2171_v53, %v2070_v19 }
 0x1b7   :  { %v3102_v24 = vpop.permute.xlu1 %1549  ;;  %v3104_v25 = vpop.permute.xlu0 %2077  ;;  %1820 = vrot.lane.b32.xlu0 %v3080_v55, %s2721_s27 }
 0x1b8   :  { %v2081_v26 = vsel %vm1530_vm0, %v3016_v3, %v3104_v25  ;;  %v3128_v3 = vsub.s32 %v3022_v6, %v1324_v29  ;;  %v1646_v6 = vsel %vm4193_vm11, %v1643_v23, %v2966_v27  ;;  %v2164_v29 = vsel %vm1641_vm10, %v2012_v7, %v2022_v2 }
 0x1b9   :  { %v3114_v17 = vsel %vm4190_vm3, %v2173_v10, %v2081_v26  ;;  %v1649_v37 = vsel %vm4187_vm12, %v1646_v6, %v1478_v20  ;;  %v2042_v26 = vsel %vm1476_vm6, %v2986_v43, %v3010_v62  ;;  %v2166_v60 = vsel %vm4193_vm11, %v2164_v29, %v2973_v31 }
 0x1ba   :  { %2369 = vrot.lane.b32.xlu1 %v3114_v17, %s2720_s26  ;;  %vm4189_vm14 = vcmp.ge.s32.totalorder %v3128_v3, 0  ;;  %vm4188_vm1 = vcmp.lt.s32.totalorder %v3128_v3, 14  ;;  %v1652_v27 = vsel %vm4194_vm15, %v1649_v37, %v2992_v50  ;;  %v2168_v22 = vsel %vm4227_vm5, %v2166_v60, %v2042_v26 }
 0x1bb   :  { %v3121_v34 = vpop.permute.xlu1 %1565  ;;  %v3123_v58 = vpop.permute.xlu0 %1536  ;;  %1792 = vrot.lane.b32.xlu0 %v3080_v55, %s2722_s4  ;;  %vm1390_vm4 = vmand %vm3147_vm9, %vm4189_vm14  ;;  %v1655_v57 = vsel %vm1653_vm13, %v1652_v27, %v1505_v54  ;;  %v1277_v43 = vsel %vm1275_vm7, 1, %v2708_v47  ;;  %vm4228_vm6 = vcmask 359424   ;;  %v2170_v31 = vsel %vm4194_vm15, %v2168_v22, %v2996_v21 }
 0x1bc   :  { %vm1392_vm12 = vmand %vm1390_vm4, %vm4188_vm1  ;;  %v1658_v50 = vsel %vm4191_vm2, %v1655_v57, %v3012_v63  ;;  %vm1257_vm4 = vcmp.ge.s32.totalorder %v3019_v5, 42  ;;  %v2062_v62 = vsel %vm4228_vm6, %v3008_v61, %v3049_v28  ;;  %v2082_v28 = vsel %vm1530_vm0, %v3104_v25, %v3085_v44 }
 0x1bd   :  { %v3192_v51 = vsel %vm1392_vm12, 1.0, %v4208_v1  ;;  %v1259_v45 = vsel %vm1257_vm4, 1, %v2708_v47  ;;  %vm1269_vm12 = vcmp.ge.s32.totalorder %v3019_v5, 70  ;;  %vm1281_vm4 = vcmp.ge.s32.totalorder %v3019_v5, 98 }
 0x1be   :  { %2355 = vrot.lane.b32.xlu1 %v3114_v17, %s2719_s25  ;;  %v1261_v4 = vadd.s32 %v1259_v45, %v1255_v46  ;;  %v1271_v10 = vsel %vm1269_vm12, 1, %v2708_v47  ;;  %v2172_v37 = vsel %vm1653_vm13, %v2170_v31, %v2062_v62  ;;  %v1283_v61 = vsel %vm1281_vm4, 1, %v2708_v47 }
 0x1bf   :  { %v3139_v33 = vpop.permute.xlu1 %2106  ;;  %v3141_v35 = vpop.permute.xlu0 %2095  ;;  %1767 = vrot.lane.b32.xlu0 %v3080_v55, %s2723_s28  ;;  %v2174_v21 = vsel %vm4191_vm2, %v2172_v37, %v3014_v0  ;;  %v1289_v44 = vsel %vm1287_vm8, 1, %v2708_v47  ;;  %vm1540_vm12 = vcmask 785408   ;;  %vm1567_vm7 = vcmask 719872  }
 0x1c0   :  { %v1267_v19 = vadd.s32 %v1265_v59, %v1261_v4  ;;  %v3276_v57 = vsel %vm4190_vm3, %v2174_v21, %v2082_v28  ;;  %vm1555_vm5 = vcmask 228352   ;;  %vm1582_vm6 = vcmask 162816  }
 0x1c1   :  { %v1556_v2 = vsel %vm1555_vm5, %v3102_v24, %v3029_v11  ;;  %vm1621_vm2 = vcmask 588800  }
 0x1c2   :  { %1835 = vrot.lane.b32.xlu1 %v3080_v55, %s2724_s29  ;;  %v1273_v16 = vadd.s32 %v1271_v10, %v1267_v19 }
 0x1c3   :  { %v3158_v38 = vpop.permute.xlu1 %1576  ;;  %v3160_v39 = vpop.permute.xlu0 %1538  ;;  %2279 = vrot.lane.b32.xlu0 %v3114_v17, %s2723_s28 }
 0x1c4   :  { %v1279_v6 = vadd.s32 %v1277_v43, %v1273_v16  ;;  %v1541_v19 = vsel %vm1540_vm12, %v3123_v58, %v3160_v39 }
 0x1c5   :  { %v1662_v26 = vsel %vm1641_vm10, %v1541_v19, %v1556_v2 }
 0x1c6   :  { %2343 = vrot.lane.b32.xlu1 %v3114_v17, %s2724_s29  ;;  %v1285_v27 = vadd.s32 %v1283_v61, %v1279_v6 }
 0x1c7   :  { %v3178_v41 = vpop.permute.xlu1 %1580  ;;  %v1529_v40 = vpop.permute.xlu0 %1528  ;;  %1740 = vrot.lane.b32.xlu0 %v3080_v55, %s2725_s30 }
 0x1c8   :  { %v1532_v42 = vsel %vm1530_vm0, %v3024_v8, %v1529_v40  ;;  %vm1293_vm0 = vcmp.ge.s32.totalorder %v3019_v5, 126 }
 0x1c9   :  { %v3187_v9 = vsel %vm4190_vm3, %v1658_v50, %v1532_v42  ;;  %v1291_v50 = vadd.s32 %v1289_v44, %v1285_v27  ;;  %v1295_v0 = vsel %vm1293_vm0, 1, %v2708_v47  ;;  %vm1594_vm0 = vcmask 654336  }
 0x1ca   :  { %2329 = vrot.lane.b32.xlu1 %v3114_v17, %s2721_s27  ;;  %v3199_v63 = vmul.f32 %v3192_v51, %v3187_v9  ;;  %vm1609_vm3 = vcmask 97280  }
 0x1cb   :  { %v3201_v8 = vpop.permute.xlu1 %2113  ;;  %v3203_v52 = vpop.permute.xlu0 %1553  ;;  %2253 = vrot.lane.b32.xlu0 %v3114_v17, %s2725_s30  ;;  %v3293_v49 = vadd.s32 %v1295_v0, %v1291_v50 }
 0x1cd   :  { %v1323_v47 = vmul.u32 14, %v3293_v49  ;;  %vm1375_vm4 = vcmp.ge.s32.totalorder %v3293_v49, 0  ;;  %vm1377_vm8 = vcmp.lt.s32.totalorder %v3293_v49, 14 }
 0x1ce   :  { %1807 = vrot.lane.b32.xlu1 %v3080_v55, %s2726_s6  ;;  %vm3334_vm14 = vmand %vm1375_vm4, %vm1377_vm8  ;;  %vm4231_vm4 = vcmask 1042432  }
 0x1cf   :  { %v3211_v56 = vpop.permute.xlu1 %2117  ;;  %v3213_v48 = vpop.permute.xlu0 %2088  ;;  %1713 = vrot.lane.b32.xlu0 %v3080_v55, %s2727_s7  ;;  %v3311_v59 = vsub.s32 %v3019_v5, %v1323_v47 }
 0x1d1   :  { %vm4192_vm1 = vcmp.ge.s32.totalorder %v3311_v59, 0 }
 0x1d2   :  { %2317 = vrot.lane.b32.xlu1 %v3114_v17, %s2726_s6  ;;  %vm1389_vm8 = vmand %vm3334_vm14, %vm4192_vm1  ;;  %vm4232_vm1 = vcmask 1042432  }
 0x1d3   :  { %v3221_v15 = vpop.permute.xlu0 %1563  ;;  %2227 = vrot.lane.b32.xlu0 %v3114_v17, %s2727_s7  ;;  %v3229_v53 = vpop.permute.xlu1 %1592 }
 0x1d4   :  { %v1568_v5 = vsel %vm1567_vm7, %v3221_v15, %v3121_v34  ;;  %v2090_v15 = vsel %vm1540_vm12, %v3033_v18, %v3213_v48  ;;  %vm4195_vm12 = vcmp.lt.s32.totalorder %v3311_v59, 14  ;;  %v2099_v18 = vsel %vm1555_vm5, %v3047_v12, %v3141_v35 }
 0x1d5   :  { %v1664_v29 = vsel %vm4193_vm11, %v1662_v26, %v1568_v5  ;;  %v2177_v62 = vsel %vm1641_vm10, %v2090_v15, %v2099_v18 }
 0x1d6   :  { %2303 = vrot.lane.b32.xlu1 %v3114_v17, %s2722_s4 }
 0x1d7   :  { %v3239_v30 = vpop.permute.xlu0 %2104  ;;  %1686 = vrot.lane.b32.xlu0 %v3080_v55, %s2728_s8  ;;  %v3253_v23 = vpop.permute.xlu1 %2126 }
 0x1da   :  { %1891 = vrot.lane.b32.xlu1 %v3080_v55, %s2729_s9 }
 0x1db   :  { %v3255_v20 = vpop.permute.xlu0 %1590  ;;  %2201 = vrot.lane.b32.xlu0 %v3114_v17, %s2728_s8  ;;  %v1604_v40 = vpop.permute.xlu1 %1603 }
 0x1dc   :  { %v1595_v60 = vsel %vm1594_vm0, %v3255_v20, %v3229_v53 }
 0x1de   :  { %1769 = vrot.lane.b32.xlu1 %v3187_v9, %s2723_s28 }
 0x1df   :  { %v3269_v54 = vpop.permute.xlu0 %2124  ;;  %1850 = vrot.lane.b32.xlu0 %v3187_v9, %s2719_s25  ;;  %v2134_v42 = vpop.permute.xlu1 %2133 }
 0x1e0   :  { %v2128_v12 = vsel %vm1594_vm0, %v3269_v54, %v3253_v23  ;;  %vm4234_vm0 = vcmask 1046528  }
 0x1e2   :  { %2281 = vrot.lane.b32.xlu1 %v3276_v57, %s2723_s28 }
 0x1e3   :  { %v3282_v25 = vpop.permute.xlu0 %1578  ;;  %2357 = vrot.lane.b32.xlu0 %v3276_v57, %s2719_s25  ;;  %v3302_v45 = vpop.permute.xlu1 %1619 }
 0x1e4   :  { %v1583_v24 = vsel %vm1582_vm6, %v3158_v38, %v3282_v25  ;;  %v2108_v38 = vsel %vm1567_vm7, %v3239_v30, %v3139_v33  ;;  %vm1636_vm7 = vcmask 31744  }
 0x1e5   :  { %v1666_v16 = vsel %vm4231_vm4, %v1664_v29, %v1583_v24  ;;  %v2179_v6 = vsel %vm4193_vm11, %v2177_v62, %v2108_v38  ;;  %vm1391_vm4 = vmand %vm1389_vm8, %vm4195_vm12  ;;  %vm4233_vm11 = vcmask 1045504   ;;  %vm4237_vm8 = vcmask 1042432  }
 0x1e6   :  { %2273 = vrot.lane.b32.xlu1 %v3276_v57, %s2730_s2  ;;  %v1668_v37 = vsel %vm4194_vm15, %v1666_v16, %v1595_v60  ;;  %v3396_v50 = vsel %vm1391_vm4, 1.0, %v4208_v1  ;;  %vm4243_vm4 = vmmov %vm4234_vm0 }
 0x1e7   :  { %v3289_v32 = vpop.permute.xlu0 %2115  ;;  %1822 = vrot.lane.b32.xlu0 %v3187_v9, %s2721_s27  ;;  %v3326_v7 = vpop.permute.xlu1 %2146 }
 0x1e8   :  { %v2119_v30 = vsel %vm1582_vm6, %v3201_v8, %v3289_v32 }
 0x1e9   :  { %v2181_v8 = vsel %vm4232_vm1, %v2179_v6, %v2119_v30  ;;  %v1584_v6 = vsel %vm1582_vm6, %v3282_v25, %v3178_v41  ;;  %vm4236_vm1 = vcmask 1041408  }
 0x1ea   :  { %1742 = vrot.lane.b32.xlu1 %v3187_v9, %s2725_s30  ;;  %v2183_v0 = vsel %vm4194_vm15, %v2181_v8, %v2128_v12  ;;  %v2120_v12 = vsel %vm1582_vm6, %v3289_v32, %v3211_v56  ;;  %vm4240_vm6 = vmmov %vm4233_vm11 }
 0x1eb   :  { %v3297_v46 = vpop.permute.xlu0 %1605  ;;  %2331 = vrot.lane.b32.xlu0 %v3276_v57, %s2721_s27  ;;  %v1631_v20 = vpop.permute.xlu1 %1630 }
 0x1ec   :  { %v1610_v43 = vsel %vm1609_vm3, %v1604_v40, %v3297_v46 }
 0x1ed   :  { %v1670_v61 = vsel %vm1653_vm13, %v1668_v37, %v1610_v43  ;;  %v1557_v43 = vsel %vm1555_vm5, %v3029_v11, %v3203_v52  ;;  %v2100_v11 = vsel %vm1555_vm5, %v3141_v35, %v3061_v14  ;;  %vm4238_vm5 = vmmov %vm4236_vm1 }
 0x1ee   :  { %2255 = vrot.lane.b32.xlu1 %v3276_v57, %s2725_s30  ;;  %v2178_v37 = vsel %vm1641_vm10, %v3213_v48, %v2100_v11 }
 0x1ef   :  { %v3306_v4 = vpop.permute.xlu0 %2135  ;;  %1794 = vrot.lane.b32.xlu0 %v3187_v9, %s2722_s4  ;;  %v2154_v47 = vpop.permute.xlu1 %2153  ;;  %v2180_v14 = vsel %vm4238_vm5, %v2178_v37, %v3139_v33 }
 0x1f0   :  { %v2139_v21 = vsel %vm1609_vm3, %v2134_v42, %v3306_v4 }
 0x1f1   :  { %v2185_v2 = vsel %vm1653_vm13, %v2183_v0, %v2139_v21  ;;  %v1406_v0 = vadd.s32 1, %v3095_v13 }
 0x1f2   :  { %2247 = vrot.lane.b32.xlu1 %v3276_v57, %s2731_s10 }
 0x1f3   :  { %v1618_v10 = vpop.permute.xlu0 %1617  ;;  %2305 = vrot.lane.b32.xlu0 %v3276_v57, %s2722_s4  ;;  %v1608_v15 = vpop.permute.xlu1 %1607 }
 0x1f4   :  { %v1622_v31 = vsel %vm1621_vm2, %v1618_v10, %v3302_v45  ;;  %v1611_v8 = vsel %vm1609_vm3, %v3297_v46, %v1608_v15 }
 0x1f5   :  { %v1672_v27 = vsel %vm4233_vm11, %v1670_v61, %v1622_v31 }
 0x1f6   :  { %1715 = vrot.lane.b32.xlu1 %v3187_v9, %s2727_s7 }
 0x1f7   :  { %v2145_v22 = vpop.permute.xlu0 %2144  ;;  %1761 = vrot.lane.b32.xlu0 %v3187_v9, %s2730_s2 }
 0x1f8   :  { %v2148_v54 = vsel %vm1621_vm2, %v2145_v22, %v3326_v7  ;;  %vm4235_vm2 = vmmov %vm4234_vm0 }
 0x1f9   :  { %v2187_v5 = vsel %vm4233_vm11, %v2185_v2, %v2148_v54 }
 0x1fa   :  { %2229 = vrot.lane.b32.xlu1 %v3276_v57, %s2727_s7 }
 0x1fb   :  { %v3381_v28 = vpop.permute.xlu0 %1632  ;;  %1734 = vrot.lane.b32.xlu0 %v3187_v9, %s2731_s10 }
 0x1fc   :  { %v1637_v40 = vsel %vm1636_vm7, %v1631_v20, %v3381_v28  ;;  %v1663_v20 = vsel %vm1641_vm10, %v3160_v39, %v1557_v43  ;;  %vm4239_vm10 = vmmov %vm4237_vm8 }
 0x1fd   :  { %v3393_v44 = vsel %vm4234_vm0, %v1672_v27, %v1637_v40  ;;  %v1665_v52 = vsel %vm4236_vm1, %v1663_v20, %v3121_v34  ;;  %v2182_v48 = vsel %vm4239_vm10, %v2180_v14, %v2120_v12  ;;  %vm1410_vm1 = vcmp.lt.s32.totalorder %v1406_v0, 14 }
 0x1fe   :  { %2221 = vrot.lane.b32.xlu1 %v3276_v57, %s2732_s1  ;;  %v3403_v42 = vmul.f32 %v3396_v50, %v3393_v44  ;;  %v1667_v41 = vsel %vm4237_vm8, %v1665_v52, %v1584_v6 }
 0x1ff   :  { %v3406_v19 = vpop.permute.xlu0 %2155  ;;  %1707 = vrot.lane.b32.xlu0 %v3187_v9, %s2732_s1  ;;  %v1669_v34 = vsel %vm4194_vm15, %v1667_v41, %v3229_v53  ;;  %v2184_v53 = vsel %vm4194_vm15, %v2182_v48, %v3253_v23  ;;  %v3553_v23 = vadd.s32 4294967295, %v3128_v3  ;;  %v3673_v48 = vadd.s32 1, %v3311_v59 }
 0x200   :  { %v2159_v10 = vsel %vm1636_vm7, %v2154_v47, %v3406_v19  ;;  %v1671_v56 = vsel %vm1653_vm13, %v1669_v34, %v1611_v8 }
 0x201   :  { %v3414_v24 = vsel %vm4235_vm2, %v2187_v5, %v2159_v10  ;;  %v1673_v33 = vsel %vm4240_vm6, %v1671_v56, %v3302_v45  ;;  %v1405_v45 = vadd.s32 1, %v3293_v49  ;;  %vm4197_vm11 = vcmp.ge.s32.totalorder %v3553_v23, 0 }
 0x202   :  { %1688 = vrot.lane.b32.xlu1 %v3187_v9, %s2728_s8  ;;  %v3420_v26 = vmul.f32 %v3396_v50, %v3414_v24  ;;  %vm1408_vm2 = vcmp.ge.s32.totalorder %v1406_v0, 0  ;;  %v4244_v5 = vmov 0  ;;  %v3579_v10 = vadd.s32 4294967295, %v3311_v59  ;;  %vm1382_vm10 = vmand %vm3147_vm9, %vm4197_vm11 }
 0x203   :  { %1678 = vrot.lane.b32.xlu0 %v3187_v9, %s2733_s3  ;;  %vm4196_vm5 = vcmp.lt.s32.totalorder %v3553_v23, 14  ;;  %vm4203_vm11 = vcmask 932864  }
 0x206   :  { %2203 = vrot.lane.b32.xlu1 %v3276_v57, %s2728_s8 }
 0x207   :  { %1878 = vrot.lane.b32.xlu0 %v3187_v9, %s2734_s0  ;;  %v2138_v9 = vpop.permute.xlu1 %2137 }
 0x208   :  { %v2140_v46 = vsel %vm1609_vm3, %v3306_v4, %v2138_v9  ;;  %vm4241_vm3 = vmmov %vm4234_vm0  ;;  %vm1409_vm0 = vcmp.lt.s32.totalorder %v1405_v45, 14 }
 0x209   :  { %v2186_v27 = vsel %vm1653_vm13, %v2184_v53, %v2140_v46  ;;  %vm4242_vm13 = vmmov %vm4240_vm6 }
 0x20a   :  { %2193 = vrot.lane.b32.xlu1 %v3276_v57, %s2733_s3  ;;  %v2188_v54 = vsel %vm4242_vm13, %v2186_v27, %v3326_v7  ;;  %vm3590_vm6 = vmand %vm1408_vm2, %vm1410_vm1 }
 0x20b   :  { %2383 = vrot.lane.b32.xlu0 %v3276_v57, %s2734_s0  ;;  %v1635_v29 = vpop.permute.xlu1 %1634 }
 0x20c   :  { %v1638_v61 = vsel %vm1636_vm7, %v3381_v28, %v1635_v29 }
 0x20d   :  { %v3541_v4 = vsel %vm4241_vm3, %v1673_v33, %v1638_v61  ;;  %vm4249_vm3 = vcmp.ge.s32.totalorder %v3311_v59, 0 }
 0x20e   :  { %1865 = vrot.lane.b32.xlu1 %v3393_v44, %s2720_s26 }
 0x20f   :  { %1852 = vrot.lane.b32.xlu0 %v3393_v44, %s2719_s25  ;;  %v2158_v38 = vpop.permute.xlu1 %2157 }
 0x210   :  { %v2160_v40 = vsel %vm1636_vm7, %v3406_v19, %v2158_v38  ;;  %vm1407_vm7 = vcmp.ge.s32.totalorder %v1405_v45, 0  ;;  %v1328_v38 = vadd.s32 4294967295, %v3095_v13  ;;  %v3636_v13 = vadd.s32 1, %v3128_v3 }
 0x211   :  { %v3561_v47 = vsel %vm4243_vm4, %v2188_v54, %v2160_v40  ;;  %vm3574_vm8 = vmand %vm1407_vm7, %vm1409_vm0  ;;  %vm4198_vm7 = vcmp.ge.s32.totalorder %v3579_v10, 0  ;;  %vm4252_vm0 = vcmp.ge.s32.totalorder %v3128_v3, 0 }
 0x212   :  { %2371 = vrot.lane.b32.xlu1 %v3414_v24, %s2720_s26  ;;  %v4245_v5 = vsel %vm3574_vm8, 4294967295, %v4244_v5  ;;  %vm1421_vm13 = vmand %vm3574_vm8, %vm4249_vm3 }
 0x213   :  { %1824 = vrot.lane.b32.xlu0 %v3393_v44, %s2721_s27  ;;  %4246 = vst [vmem:[#allocation10_spill] sm:$0xff] %v4245_v5  ;;  %vm3604_vm4 = vmand %vm1382_vm10, %vm4196_vm5  ;;  %vm4199_vm10 = vcmp.lt.s32.totalorder %v3579_v10, 14  ;;  %vm1332_vm5 = vcmp.lt.s32.totalorder %v1328_v38, 14 }
 0x214   :  { %vm1422_vm2 = vmand %vm3590_vm6, %vm4252_vm0  ;;  %vm4255_vm0 = vcmp.lt.s32.totalorder %v3128_v3, 14  ;;  %v3645_v11 = vsel %vm3604_vm4, 1.0, %v4208_v1  ;;  %vm4258_vm4 = vcmp.ge.s32.totalorder %v3579_v10, 0 }
 0x215   :  { %vm3620_vm1 = vmand %vm1421_vm13, %vm4195_vm12  ;;  %vm4202_vm13 = vcmask 7168   ;;  %vm1330_vm12 = vcmp.ge.s32.totalorder %v1328_v38, 0 }
 0x216   :  { %2359 = vrot.lane.b32.xlu1 %v3414_v24, %s2719_s25  ;;  %vm1381_vm3 = vmand %vm3334_vm14, %vm4198_vm7  ;;  %vm4201_vm7 = vcmask 441344   ;;  %v3656_v41 = vsel %vm3620_vm1, 1.0, %v4208_v1 }
 0x217   :  { %1796 = vrot.lane.b32.xlu0 %v3393_v44, %s2722_s4  ;;  %vm1424_vm15 = vmand %vm1422_vm2, %vm4255_vm0 }
 0x218   :  { %vm3649_vm2 = vmand %vm1381_vm3, %vm4199_vm10  ;;  %v3659_v12 = vsel %vm1424_vm15, 1.0, %v4208_v1  ;;  %vm4200_vm10 = vcmp.ge.s32.totalorder %v3636_v13, 0  ;;  %vm4261_vm15 = vcmp.ge.s32.totalorder %v3553_v23, 0 }
 0x219   :  { %vm1413_vm0 = vmand %vm3574_vm8, %vm4258_vm4  ;;  %v3717_v0 = vsel %vm3649_vm2, 1.0, %v4208_v1  ;;  %vm1841_vm2 = vcmask 449536  }
 0x21a   :  { %1837 = vrot.lane.b32.xlu1 %v3393_v44, %s2724_s29  ;;  %vm3667_vm3 = vmand %vm1330_vm12, %vm1332_vm5  ;;  %vm4262_vm5 = vcmp.lt.s32.totalorder %v3579_v10, 14 }
 0x21b   :  { %1771 = vrot.lane.b32.xlu0 %v3393_v44, %s2723_s28  ;;  %vm1414_vm12 = vmand %vm3590_vm6, %vm4261_vm15  ;;  %vm4204_vm15 = vcmp.lt.s32.totalorder %v3636_v13, 14 }
 0x21c   :  { %vm3698_vm1 = vmand %vm1413_vm0, %vm4262_vm5  ;;  %vm4267_vm0 = vcmp.lt.s32.totalorder %v3553_v23, 14 }
 0x21d   :  { %vm3707_vm4 = vmand %vm3667_vm3, %vm4200_vm10  ;;  %vm1828_vm10 = vcmask 941056  }
 0x21e   :  { %2345 = vrot.lane.b32.xlu1 %v3414_v24, %s2724_s29  ;;  %vm3721_vm5 = vmand %vm1414_vm12, %vm4267_vm0 }
 0x21f   :  { %2283 = vrot.lane.b32.xlu0 %v3414_v24, %s2723_s28  ;;  %vm3747_vm12 = vmand %vm3707_vm4, %vm4204_vm15  ;;  %vm4274_vm15 = vcmask 7168  }
 0x222   :  { %2333 = vrot.lane.b32.xlu1 %v3414_v24, %s2721_s27 }
 0x223   :  { %1744 = vrot.lane.b32.xlu0 %v3393_v44, %s2725_s30 }
 0x225   :  { %v3456_v60 = vpop.permute.xlu0 %1848  ;;  %v3462_v16 = vpop.permute.xlu1 %1863 }
 0x226   :  { %1809 = vrot.lane.b32.xlu1 %v3393_v44, %s2726_s6 }
 0x227   :  { %2257 = vrot.lane.b32.xlu0 %v3414_v24, %s2725_s30 }
 0x229   :  { %v3464_v22 = vpop.permute.xlu0 %1820 }
 0x22a   :  { %2319 = vrot.lane.b32.xlu1 %v3414_v24, %s2726_s6 }
 0x22b   :  { %1717 = vrot.lane.b32.xlu0 %v3393_v44, %s2727_s7 }
 0x22c   :  { %v3470_v18 = vpop.permute.xlu1 %2369 }
 0x22d   :  { %v3472_v30 = vpop.permute.xlu0 %1792 }
 0x22e   :  { %2307 = vrot.lane.b32.xlu1 %v3414_v24, %s2722_s4 }
 0x22f   :  { %2231 = vrot.lane.b32.xlu0 %v3414_v24, %s2727_s7 }
 0x230   :  { %v3481_v62 = vpop.permute.xlu1 %2355 }
 0x231   :  { %v3485_v31 = vpop.permute.xlu0 %1767 }
 0x232   :  { %1893 = vrot.lane.b32.xlu1 %v3393_v44, %s2729_s9 }
 0x233   :  { %1690 = vrot.lane.b32.xlu0 %v3393_v44, %s2728_s8 }
 0x234   :  { %v3499_v39 = vpop.permute.xlu1 %1835 }
 0x235   :  { %v3504_v25 = vpop.permute.xlu0 %2279 }
 0x236   :  { %2397 = vrot.lane.b32.xlu1 %v3414_v24, %s2729_s9 }
 0x237   :  { %2205 = vrot.lane.b32.xlu0 %v3414_v24, %s2728_s8 }
 0x238   :  { %v3519_v35 = vpop.permute.xlu1 %2343 }
 0x239   :  { %v3523_v32 = vpop.permute.xlu0 %1740 }
 0x23a   :  { %2385 = vrot.lane.b32.xlu1 %v3414_v24, %s2734_s0 }
 0x23b   :  { %1880 = vrot.lane.b32.xlu0 %v3393_v44, %s2734_s0 }
 0x23c   :  { %v3537_v21 = vpop.permute.xlu1 %2329 }
 0x23d   :  { %v3543_v28 = vpop.permute.xlu0 %2253 }
 0x23e   :  { %1773 = vrot.lane.b32.xlu1 %v3541_v4, %s2723_s28 }
 0x23f   :  { %1854 = vrot.lane.b32.xlu0 %v3541_v4, %s2719_s25 }
 0x240   :  { %v3557_v44 = vpop.permute.xlu1 %1807 }
 0x241   :  { %v3563_v2 = vpop.permute.xlu0 %1713 }
 0x242   :  { %2285 = vrot.lane.b32.xlu1 %v3561_v47, %s2723_s28 }
 0x243   :  { %2361 = vrot.lane.b32.xlu0 %v3561_v47, %s2719_s25 }
 0x244   :  { %v3570_v7 = vpop.permute.xlu1 %2317 }
 0x245   :  { %v3572_v19 = vpop.permute.xlu0 %2227 }
 0x246   :  { %2275 = vrot.lane.b32.xlu1 %v3561_v47, %s2730_s2 }
 0x247   :  { %1826 = vrot.lane.b32.xlu0 %v3541_v4, %s2721_s27 }
 0x248   :  { %v3594_v15 = vpop.permute.xlu1 %2303 }
 0x249   :  { %v3600_v9 = vpop.permute.xlu0 %1686 }
 0x24a   :  { %1746 = vrot.lane.b32.xlu1 %v3541_v4, %s2725_s30 }
 0x24b   :  { %2335 = vrot.lane.b32.xlu0 %v3561_v47, %s2721_s27 }
 0x24c   :  { %v3624_v20 = vpop.permute.xlu1 %1891 }
 0x24d   :  { %v3631_v6 = vpop.permute.xlu0 %2201 }
 0x24e   :  { %2259 = vrot.lane.b32.xlu1 %v3561_v47, %s2725_s30 }
 0x24f   :  { %1798 = vrot.lane.b32.xlu0 %v3541_v4, %s2722_s4 }
 0x250   :  { %v1770_v37 = vpop.permute.xlu1 %1769 }
 0x251   :  { %v1776_v8 = vsel %vm4202_vm13, %v3485_v31, %v1770_v37  ;;  %v1851_v14 = vpop.permute.xlu0 %1850 }
 0x252   :  { %v3676_v56 = vmul.f32 %v3645_v11, %v1776_v8  ;;  %v1857_v46 = vsel %vm4203_vm11, %v3456_v60, %v1851_v14  ;;  %v1870_v61 = vsel %vm4201_vm7, %v1851_v14, %v3462_v16  ;;  %2249 = vrot.lane.b32.xlu1 %v3561_v47, %s2731_s10  ;;  %v1327_v16 = vadd.s32 4294967295, %v3293_v49 }
 0x253   :  { %v3689_v33 = vmul.f32 %v3656_v41, %v1857_v46  ;;  %v3692_v53 = vmul.f32 %v3659_v12, %v1870_v61  ;;  %2309 = vrot.lane.b32.xlu0 %v3561_v47, %s2722_s4  ;;  %vm4205_vm7 = vcmp.ge.s32.totalorder %v3673_v48, 0  ;;  %v3754_v8 = vsel %vm3698_vm1, 1.0, %v4208_v1 }
 0x254   :  { %v2282_v27 = vpop.permute.xlu1 %2281  ;;  %vm1331_vm0 = vcmp.lt.s32.totalorder %v1327_v16, 14  ;;  %v3759_v14 = vsel %vm3721_vm5, 1.0, %v4208_v1  ;;  %vm1397_vm4 = vmand %vm3334_vm14, %vm4205_vm7  ;;  %vm1748_vm14 = vcmask 105472  }
 0x255   :  { %v2287_v45 = vsel %vm4202_vm13, %v3504_v25, %v2282_v27  ;;  %v2358_v54 = vpop.permute.xlu0 %2357  ;;  %vm4271_vm13 = vcmask 441344  }
 0x256   :  { %v3727_v29 = vmul.f32 %v3645_v11, %v2287_v45  ;;  %v2363_v38 = vsel %vm4203_vm11, %v3481_v62, %v2358_v54  ;;  %v2375_v43 = vsel %vm4271_vm13, %v2358_v54, %v3470_v18  ;;  %1719 = vrot.lane.b32.xlu1 %v3541_v4, %s2727_s7  ;;  %vm1367_vm11 = vcmp.lt.s32.totalorder %v3673_v48, 14 }
 0x257   :  { %v3736_v52 = vmul.f32 %v3656_v41, %v2363_v38  ;;  %v3739_v37 = vmul.f32 %v3659_v12, %v2375_v43  ;;  %1763 = vrot.lane.b32.xlu0 %v3541_v4, %s2730_s2  ;;  %vm4275_vm13 = vcmp.ge.s32.totalorder %v3636_v13, 0 }
 0x258   :  { %4270 = vst [vmem:[#allocation11_spill] sm:$0xff] %v3727_v29  ;;  %v2274_v18 = vpop.permute.xlu1 %2273  ;;  %vm1398_vm1 = vmand %vm3147_vm9, %vm4275_vm13  ;;  %vm4282_vm13 = vcmp.lt.s32.totalorder %v3636_v13, 14 }
 0x259   :  { %v2293_v46 = vsel %vm4274_vm15, %v2274_v18, %v3504_v25  ;;  %v1823_v61 = vpop.permute.xlu0 %1822  ;;  %vm4277_vm15 = vcmp.ge.s32.totalorder %v1327_v16, 0  ;;  %vm3801_vm9 = vmand %vm1397_vm4, %vm1367_vm11  ;;  %vm1800_vm4 = vcmask 1039360  }
 0x25a   :  { %v3773_v60 = vmul.f32 %v3717_v0, %v2293_v46  ;;  %v1829_v27 = vsel %vm1828_vm10, %v3464_v22, %v1823_v61  ;;  %v1842_v40 = vsel %vm1841_vm2, %v1823_v61, %v3499_v39  ;;  %2233 = vrot.lane.b32.xlu1 %v3561_v47, %s2727_s7  ;;  %vm3782_vm5 = vmand %vm4277_vm15, %vm1331_vm0  ;;  %v3797_v22 = vsel %vm3747_vm12, 1.0, %v4208_v1 }
 0x25b   :  { %v3787_v36 = vmul.f32 %v3754_v8, %v1829_v27  ;;  %v3790_v25 = vmul.f32 %v3759_v14, %v1842_v40  ;;  %1736 = vrot.lane.b32.xlu0 %v3541_v4, %s2731_s10  ;;  %vm1400_vm0 = vmand %vm1398_vm1, %vm4282_vm13  ;;  %vm1813_vm1 = vcmask 547840   ;;  %vm4284_vm13 = vcmp.ge.s32.totalorder %v3128_v3, 0 }
 0x25c   :  { %4276 = vst [vmem:[#allocation12_spill] sm:$0xff] %v3773_v60  ;;  %v1743_v16 = vpop.permute.xlu1 %1742  ;;  %vm1365_vm12 = vmand %vm3782_vm5, %vm4205_vm7 }
 0x25d   :  { %v1749_v45 = vsel %vm1748_vm14, %v3523_v32, %v1743_v16  ;;  %v2332_v54 = vpop.permute.xlu0 %2331  ;;  %vm1369_vm15 = vmand %vm1365_vm12, %vm1367_vm11  ;;  %vm1917_vm12 = vcmask 130048  }
 0x25e   :  { %v3814_v49 = vmul.f32 %v3797_v22, %v1749_v45  ;;  %v2337_v38 = vsel %vm1828_vm10, %v3537_v21, %v2332_v54  ;;  %v2349_v43 = vsel %vm1841_vm2, %v2332_v54, %v3519_v35  ;;  %2223 = vrot.lane.b32.xlu1 %v3561_v47, %s2732_s1  ;;  %v3833_v21 = vsel %vm3801_vm9, 1.0, %v4208_v1  ;;  %vm1352_vm7 = vmand %vm3667_vm3, %vm4284_vm13 }
 0x25f   :  { %v3823_v62 = vmul.f32 %v3754_v8, %v2337_v38  ;;  %v3826_v18 = vmul.f32 %v3759_v14, %v2349_v43  ;;  %1709 = vrot.lane.b32.xlu0 %v3541_v4, %s2732_s1  ;;  %v3836_v35 = vsel %vm1400_vm0, 1.0, %v4208_v1  ;;  %v3864_v38 = vsel %vm1369_vm15, 1.0, %v4208_v1  ;;  %v3866_v43 = vld [vmem:[#allocation7] sm:$0xff] }
 0x260   :  { %4283 = vst [vmem:[#allocation13_spill] sm:$0xff] %v3814_v49  ;;  %v2256_v46 = vpop.permute.xlu1 %2255  ;;  %4286 = vst [vmem:[#allocation15_spill] sm:$0xff] %v3866_v43  ;;  %vm4287_vm9 = vcmp.lt.s32.totalorder %v3128_v3, 14  ;;  %vm4290_vm15 = vcmp.ge.s32.totalorder %v3311_v59, 0 }
 0x261   :  { %v2261_v61 = vsel %vm1748_vm14, %v3543_v28, %v2256_v46  ;;  %v1795_v27 = vpop.permute.xlu0 %1794  ;;  %vm1356_vm0 = vmand %vm1352_vm7, %vm4287_vm9  ;;  %vm1721_vm7 = vcmask 113664   ;;  %vm4292_vm9 = vcmask 7168  }
 0x262   :  { %v3847_v40 = vmul.f32 %v3797_v22, %v2261_v61  ;;  %v1801_v39 = vsel %vm1800_vm4, %v3472_v30, %v1795_v27  ;;  %v1814_v16 = vsel %vm1813_vm1, %v1795_v27, %v3557_v44  ;;  %1692 = vrot.lane.b32.xlu1 %v3541_v4, %s2728_s8  ;;  %v1916_v44 = vcombine.high %v3866_v43, %v3866_v43  ;;  %vm1351_vm13 = vmand %vm3782_vm5, %vm4290_vm15 }
 0x263   :  { %v3856_v45 = vmul.f32 %v3833_v21, %v1801_v39  ;;  %v3859_v54 = vmul.f32 %v3836_v35, %v1814_v16  ;;  %1680 = vrot.lane.b32.xlu0 %v3541_v4, %s2733_s3  ;;  %vm4294_vm15 = vcmp.ge.s32.totalorder %v3553_v23, 0 }
 0x264   :  { %4285 = vst [vmem:[#allocation14_spill] sm:$0xff] %v3847_v40  ;;  %v2248_v30 = vpop.permute.xlu1 %2247  ;;  %2550 = vmatprep.mubr.msk.f32.mxu1 %vm1917_vm12, %v1916_v44  ;;  %2554 = vmatprep.mubr.msk.f32.mxu0 %vm1917_vm12, %v1916_v44 }
 0x265   :  { %v2267_v46 = vsel %vm1748_vm14, %v2248_v30, %v3543_v28  ;;  %v2306_v61 = vpop.permute.xlu0 %2305  ;;  %v3892_v30 = vsel %vm1356_vm0, 1.0, %v4208_v1  ;;  %vm4293_vm0 = vcmp.lt.s32.totalorder %v3311_v59, 14 }
 0x266   :  { %v3875_v27 = vmul.f32 %v3864_v38, %v2267_v46  ;;  %v2311_v39 = vsel %vm1800_vm4, %v3594_v15, %v2306_v61  ;;  %v2323_v16 = vsel %vm1813_vm1, %v2306_v61, %v3570_v7  ;;  %2207 = vrot.lane.b32.xlu1 %v3561_v47, %s2728_s8  ;;  %4289 = vst [vmem:[#allocation17_spill] sm:$0xff] %v3892_v30  ;;  %vm1355_vm12 = vmand %vm1351_vm13, %vm4293_vm0  ;;  %vm4296_vm13 = vcmp.ge.s32.totalorder %v3579_v10, 0 }
 0x267   :  { %v3884_v3 = vmul.f32 %v3833_v21, %v2311_v39  ;;  %v3887_v28 = vmul.f32 %v3836_v35, %v2323_v16  ;;  %1882 = vrot.lane.b32.xlu0 %v3541_v4, %s2734_s0  ;;  %vm1339_vm0 = vmand %vm3782_vm5, %vm4296_vm13  ;;  %v3937_v34 = vsel %vm1355_vm12, 1.0, %v4208_v1  ;;  %vm4300_vm5 = vcmp.lt.s32.totalorder %v3579_v10, 14 }
 0x268   :  { %4288 = vst [vmem:[#allocation16_spill] sm:$0xff] %v3875_v27  ;;  %v1716_v15 = vpop.permute.xlu1 %1715  ;;  %4298 = vst [vmem:[#allocation21_spill] sm:$0xff] %v3937_v34  ;;  %vm1694_vm12 = vcmask 121856  }
 0x269   :  { %v1722_v7 = vsel %vm1721_vm7, %v3563_v2, %v1716_v15  ;;  %v1762_v46 = vpop.permute.xlu0 %1761  ;;  %vm1343_vm13 = vmand %vm1339_vm0, %vm4300_vm5  ;;  %vm4306_vm0 = vcmp.lt.s32.totalorder %v3636_v13, 14 }
 0x26a   :  { %v3901_v61 = vmul.f32 %v3892_v30, %v1722_v7  ;;  %v1782_v39 = vsel %vm4292_vm9, %v1762_v46, %v3485_v31  ;;  %2195 = vrot.lane.b32.xlu1 %v3561_v47, %s2733_s3  ;;  %vm1340_vm9 = vmand %vm3667_vm3, %vm4294_vm15  ;;  %vm4299_vm3 = vcmp.lt.s32.totalorder %v3553_v23, 14 }
 0x26b   :  { %v3908_v44 = vmul.f32 %v3717_v0, %v1782_v39  ;;  %2387 = vrot.lane.b32.xlu0 %v3561_v47, %s2734_s0  ;;  %vm1344_vm15 = vmand %vm1340_vm9, %vm4299_vm3  ;;  %vm4302_vm9 = vcmp.ge.s32.totalorder %v3636_v13, 0 }
 0x26c   :  { %4291 = vst [vmem:[#allocation18_spill] sm:$0xff] %v3901_v61  ;;  %v2230_v16 = vpop.permute.xlu1 %2229  ;;  %vm1430_vm3 = vmand %vm3590_vm6, %vm4302_vm9  ;;  %vm1897_vm6 = vcmask 433152  }
 0x26d   :  { %v2235_v15 = vsel %vm1721_vm7, %v3572_v19, %v2230_v16  ;;  %v1735_v7 = vpop.permute.xlu0 %1734  ;;  %vm1432_vm5 = vmand %vm1430_vm3, %vm4306_vm0  ;;  %vm4330_vm0 = vcmp.ge.s32.totalorder %v3673_v48, 0 }
 0x26e   :  { %v3921_v31 = vmul.f32 %v3892_v30, %v2235_v15  ;;  %v1755_v46 = vsel %vm1748_vm14, %v1735_v7, %v3523_v32  ;;  %2395 = vrot.lane.b32.xlu1 %v3114_v17, %s2729_s9  ;;  %v2549_v32 = vld [vmem:[#allocation2] ss:$0 sm:$0xff]  ;;  %v3978_v43 = vsel %vm1432_vm5, 1.0, %v4208_v1  ;;  %vm4108_vm5 = vmand %vm3574_vm8, %vm4330_vm0 }
 0x26f   :  { %v3932_v59 = vmul.f32 %v3864_v38, %v1755_v46  ;;  %1876 = vrot.lane.b32.xlu0 %v3080_v55, %s2734_s0  ;;  %v3963_v46 = vsel %vm1343_vm13, 1.0, %v4208_v1  ;;  %4309 = vst [vmem:[#allocation28_spill] sm:$0xff] %v3978_v43  ;;  %vm4323_vm13 = vcmask 441344   ;;  %vm1431_vm8 = vmand %vm4108_vm5, %vm1367_vm11  ;;  %vm2007_vm11 = vcmask 556036  }
 0x270   :  { %4295 = vst [vmem:[#allocation19_spill] sm:$0xff] %v3921_v31  ;;  %v2222_v39 = vpop.permute.xlu1 %2221  ;;  %4305 = vst [vmem:[#allocation25_spill] sm:$0xff] %v3963_v46 }
 0x271   :  { %4297 = vst [vmem:[#allocation20_spill] sm:$0xff] %v3932_v59  ;;  %v2241_v16 = vsel %vm1721_vm7, %v2222_v39, %v3572_v19  ;;  %v1708_v15 = vpop.permute.xlu0 %1707  ;;  %v3960_v19 = vsel %vm1344_vm15, 1.0, %v4208_v1  ;;  %vm4322_vm15 = vcmask 932864   ;;  %vm4325_vm3 = vmmov %vm4323_vm13 }
 0x272   :  { %v3946_v58 = vmul.f32 %v3937_v34, %v2241_v16  ;;  %v1728_v7 = vsel %vm1721_vm7, %v1708_v15, %v3563_v2  ;;  %2381 = vrot.lane.b32.xlu1 %v3114_v17, %s2734_s0  ;;  %4304 = vst [vmem:[#allocation24_spill] sm:$0xff] %v3960_v19  ;;  %vm4324_vm9 = vmmov %vm4322_vm15 }
 0x273   :  { %v3957_v23 = vmul.f32 %v3937_v34, %v1728_v7  ;;  %1912 = vperm.xlu0 %2613, %v2549_v32  }
 0x274   :  { %4301 = vst [vmem:[#allocation22_spill] sm:$0xff] %v3946_v58  ;;  %v1689_v10 = vpop.permute.xlu1 %1688 }
 0x275   :  { %4303 = vst [vmem:[#allocation23_spill] sm:$0xff] %v3957_v23  ;;  %v1695_v2 = vsel %vm1694_vm12, %v3600_v9, %v1689_v10  ;;  %v1679_v39 = vpop.permute.xlu0 %1678 }
 0x276   :  { %v3970_v24 = vmul.f32 %v3960_v19, %v1695_v2  ;;  %v1701_v16 = vsel %vm1694_vm12, %v1679_v39, %v3600_v9  ;;  %2415 = vperm.xlu1 %2614, %v2549_v32  }
 0x277   :  { %v3975_v15 = vmul.f32 %v3963_v46, %v1701_v16 }
 0x278   :  { %4307 = vst [vmem:[#allocation26_spill] sm:$0xff] %v3970_v24  ;;  %v2204_v7 = vpop.permute.xlu1 %2203 }
 0x279   :  { %4308 = vst [vmem:[#allocation27_spill] sm:$0xff] %v3975_v15  ;;  %v2209_v10 = vsel %vm1694_vm12, %v3631_v6, %v2204_v7  ;;  %v3982_v13 = vpop.permute.xlu0 %1878 }
 0x27a   :  { %4310 = vst [vmem:[#allocation29_spill] sm:$0xff] %v3982_v13  ;;  %v3985_v2 = vmul.f32 %v3960_v19, %v2209_v10  ;;  %v1898_v9 = vsel %vm1897_vm6, %v3982_v13, %v3624_v20 }
 0x27b   :  { %v3991_v32 = vmul.f32 %v3978_v43, %v1898_v9 }
 0x27c   :  { %4311 = vst [vmem:[#allocation30_spill] sm:$0xff] %v3985_v2  ;;  %v2194_v39 = vpop.permute.xlu1 %2193 }
 0x27d   :  { %4312 = vst [vmem:[#allocation31_spill] sm:$0xff] %v3991_v32  ;;  %v2215_v16 = vsel %vm1694_vm12, %v2194_v39, %v3631_v6  ;;  %v3995_v1 = vpop.permute.xlu0 %2383 }
 0x27e   :  { %4313 = vst [vmem:[#allocation32_spill] sm:$0xff] %v3995_v1  ;;  %v3998_v7 = vmul.f32 %v3963_v46, %v2215_v16 }
 0x280   :  { %4314 = vst [vmem:[#allocation33_spill] sm:$0xff] %v3998_v7  ;;  %v1866_v15 = vpop.permute.xlu1 %1865 }
 0x281   :  { %v1853_v58 = vpop.permute.xlu0 %1852 }
 0x284   :  { %v2372_v10 = vpop.permute.xlu1 %2371 }
 0x285   :  { %v1825_v2 = vpop.permute.xlu0 %1824 }
 0x288   :  { %v2360_v31 = vpop.permute.xlu1 %2359 }
 0x289   :  { %v1797_v24 = vpop.permute.xlu0 %1796 }
 0x28c   :  { %v1838_v23 = vpop.permute.xlu1 %1837 }
 0x28d   :  { %v4000_v20 = vpop.permute.xlu0 %1771 }
 0x290   :  { %v2346_v9 = vpop.permute.xlu1 %2345 }
 0x291   :  { %v4002_v13 = vpop.permute.xlu0 %2283 }
 0x294   :  { %v2334_v32 = vpop.permute.xlu1 %2333 }
 0x295   :  { %v4004_v43 = vpop.permute.xlu0 %1744 }
 0x298   :  { %v1810_v6 = vpop.permute.xlu1 %1809 }
 0x299   :  { %v4006_v39 = vpop.permute.xlu0 %2257 }
 0x29c   :  { %v2320_v16 = vpop.permute.xlu1 %2319 }
 0x29d   :  { %v4008_v7 = vpop.permute.xlu0 %1717 }
 0x2a0   :  { %v2308_v1 = vpop.permute.xlu1 %2307 }
 0x2a1   :  { %v4010_v27 = vpop.permute.xlu0 %2231 }
 0x2a2   :  { %4315 = vst [vmem:[#allocation34_spill] sm:$0xff] %v4010_v27 }
 0x2a4   :  { %v4012_v40 = vpop.permute.xlu1 %1893 }
 0x2a5   :  { %4316 = vst [vmem:[#allocation35_spill] sm:$0xff] %v4012_v40  ;;  %v4014_v61 = vpop.permute.xlu0 %1690 }
 0x2a6   :  { %4317 = vst [vmem:[#allocation36_spill] sm:$0xff] %v4014_v61 }
 0x2a8   :  { %v4016_v46 = vpop.permute.xlu1 %2397 }
 0x2a9   :  { %4318 = vst [vmem:[#allocation37_spill] sm:$0xff] %v4016_v46  ;;  %v4018_v19 = vpop.permute.xlu0 %2205 }
 0x2aa   :  { %4319 = vst [vmem:[#allocation38_spill] sm:$0xff] %v4018_v19 }
 0x2ac   :  { %v4020_v59 = vpop.permute.xlu1 %2385 }
 0x2ad   :  { %4320 = vst [vmem:[#allocation39_spill] sm:$0xff] %v4020_v59  ;;  %v4022_v60 = vpop.permute.xlu0 %1880 }
 0x2ae   :  { %4321 = vst [vmem:[#allocation40_spill] sm:$0xff] %v4022_v60 }
 0x2b0   :  { %v1774_v29 = vpop.permute.xlu1 %1773 }
 0x2b1   :  { %v1855_v49 = vpop.permute.xlu0 %1854 }
 0x2b2   :  { %v1858_v34 = vsel %vm4322_vm15, %v1853_v58, %v1855_v49  ;;  %v1871_v30 = vsel %vm4323_vm13, %v1855_v49, %v1866_v15  ;;  %v1791_v15 = vmul.f32 %v3192_v51, %v3541_v4 }
 0x2b3   :  { %v1874_v27 = vmul.f32 %v3656_v41, %v1858_v34  ;;  %v1875_v40 = vmul.f32 %v3659_v12, %v1871_v30 }
 0x2b4   :  { %v4028_v5 = vpop.permute.xlu1 %2285 }
 0x2b5   :  { %v2362_v61 = vpop.permute.xlu0 %2361  ;;  %1920 = vmatprep.subr.mxu1 %v1875_v40 }
 0x2b6   :  { %v2364_v46 = vsel %vm4324_vm9, %v2360_v31, %v2362_v61  ;;  %v2376_v59 = vsel %vm4325_vm3, %v2362_v61, %v2372_v10  ;;  %1921 = vmatpush1.msra.mxu1 %v1874_v27  ;;  %v4334_v10 = vld [vmem:[#allocation17_spill] sm:$0xff] }
 0x2b7   :  { %v2379_v60 = vmul.f32 %v3656_v41, %v2364_v46  ;;  %v2380_v19 = vmul.f32 %v3659_v12, %v2376_v59  ;;  %1922 = vmatprep.subr.mxu1 %v3692_v53 }
 0x2b8   :  { %1923 = vmatpush1.msra.mxu1 %v3689_v33  ;;  %v2276_v49 = vpop.permute.xlu1 %2275 }
 0x2b9   :  { %v1827_v34 = vpop.permute.xlu0 %1826  ;;  %2422 = vmatprep.subr.mxu0 %v2380_v19 }
 0x2ba   :  { %v1830_v30 = vsel %vm1828_vm10, %v1825_v2, %v1827_v34  ;;  %v1843_v40 = vsel %vm1841_vm2, %v1827_v34, %v1838_v23  ;;  %2423 = vmatpush1.msra.mxu0 %v2379_v60 }
 0x2bb   :  { %v1846_v31 = vmul.f32 %v3754_v8, %v1830_v30  ;;  %v1847_v27 = vmul.f32 %v3759_v14, %v1843_v40  ;;  %2424 = vmatprep.subr.mxu0 %v3739_v37  ;;  %v4339_v30 = vld [vmem:[#allocation12_spill] sm:$0xff] }
 0x2bc   :  { %2425 = vmatpush1.msra.mxu0 %v3736_v52  ;;  %v1747_v41 = vpop.permute.xlu1 %1746 }
 0x2bd   :  { %v2336_v12 = vpop.permute.xlu0 %2335  ;;  %1924 = vmatprep.subr.mxu1 %v1847_v27  ;;  %v4341_v27 = vld [vmem:[#allocation36_spill] sm:$0xff] }
 0x2be   :  { %v2338_v33 = vsel %vm1828_vm10, %v2334_v32, %v2336_v12  ;;  %v2350_v53 = vsel %vm1841_vm2, %v2336_v12, %v2346_v9  ;;  %1925 = vmatpush1.msra.mxu1 %v1846_v31  ;;  %vm4326_vm10 = vcmask 7168   ;;  %v4335_v9 = vld [vmem:[#allocation21_spill] sm:$0xff]  ;;  %v4340_v31 = vld [vmem:[#allocation20_spill] sm:$0xff] }
 0x2bf   :  { %v2353_v61 = vmul.f32 %v3754_v8, %v2338_v33  ;;  %v2354_v60 = vmul.f32 %v3759_v14, %v2350_v53  ;;  %1926 = vmatprep.subr.mxu1 %v3790_v25  ;;  %vm4327_vm2 = vmmov %vm4326_vm10 }
 0x2c0   :  { %1927 = vmatpush1.msra.mxu1 %v3787_v36  ;;  %v2260_v59 = vpop.permute.xlu1 %2259 }
 0x2c1   :  { %v1799_v37 = vpop.permute.xlu0 %1798  ;;  %2426 = vmatprep.subr.mxu0 %v2354_v60  ;;  %v4343_v60 = vld [vmem:[#allocation25_spill] sm:$0xff] }
 0x2c2   :  { %v1802_v52 = vsel %vm1800_vm4, %v1797_v24, %v1799_v37  ;;  %v1815_v58 = vsel %vm1813_vm1, %v1799_v37, %v1810_v6  ;;  %2427 = vmatpush1.msra.mxu0 %v2353_v61  ;;  %v4344_v37 = vld [vmem:[#allocation18_spill] sm:$0xff] }
 0x2c3   :  { %v1818_v23 = vmul.f32 %v3833_v21, %v1802_v52  ;;  %v1819_v19 = vmul.f32 %v3836_v35, %v1815_v58  ;;  %2428 = vmatprep.subr.mxu0 %v3826_v18  ;;  %v4345_v52 = vld [vmem:[#allocation14_spill] sm:$0xff]  ;;  %v4346_v58 = vld [vmem:[#allocation16_spill] sm:$0xff] }
 0x2c4   :  { %2429 = vmatpush1.msra.mxu0 %v3823_v62  ;;  %v2250_v8 = vpop.permute.xlu1 %2249  ;;  %v1777_v62 = vsel %vm4326_vm10, %v4000_v20, %v1774_v29  ;;  %v2302_v29 = vmul.f32 %v3192_v51, %v3561_v47  ;;  %v2300_v47 = vmul.f32 %v3192_v51, %v3276_v57  ;;  %v2262_v57 = vsel %vm1748_vm14, %v4006_v39, %v2260_v59 }
 0x2c5   :  { %v2310_v14 = vpop.permute.xlu0 %2309  ;;  %1928 = vmatprep.subr.mxu1 %v1819_v19  ;;  %v1787_v4 = vmul.f32 %v3645_v11, %v1777_v62  ;;  %v4347_v19 = vld [vmem:[#allocation23_spill] sm:$0xff] }
 0x2c6   :  { %v2312_v36 = vsel %vm1800_vm4, %v2308_v1, %v2310_v14  ;;  %v2324_v25 = vsel %vm1813_vm1, %v2310_v14, %v2320_v16  ;;  %1929 = vmatpush1.msra.mxu1 %v1818_v23  ;;  %vm4328_vm4 = vmmov %vm4327_vm2  ;;  %v4337_v16 = vld [vmem:[#allocation11_spill] sm:$0xff] }
 0x2c7   :  { %v2327_v46 = vmul.f32 %v3833_v21, %v2312_v36  ;;  %v2328_v24 = vmul.f32 %v3836_v35, %v2324_v25  ;;  %1930 = vmatprep.subr.mxu1 %v3859_v54  ;;  %v1788_v21 = vmul.f32 %v3396_v50, %v3080_v55  ;;  %vm4329_vm1 = vmmov %vm4327_vm2  ;;  %v4349_v36 = vld [vmem:[#allocation38_spill] sm:$0xff] }
 0x2c8   :  { %1931 = vmatpush1.msra.mxu1 %v3856_v45  ;;  %v1720_v18 = vpop.permute.xlu1 %1719  ;;  %v2288_v45 = vsel %vm4328_vm4, %v4002_v13, %v4028_v5  ;;  %v2294_v54 = vsel %vm4329_vm1, %v2276_v49, %v4002_v13  ;;  %v2299_v5 = vmul.f32 %v3396_v50, %v3114_v17  ;;  %v2268_v17 = vsel %vm1748_vm14, %v2250_v8, %v4006_v39  ;;  %v4336_v39 = vld [vmem:[#allocation13_spill] sm:$0xff]  ;;  %v4338_v49 = vld [vmem:[#allocation34_spill] sm:$0xff] }
 0x2c9   :  { %v1764_v2 = vpop.permute.xlu0 %1763  ;;  %1932 = vmatprep.subr.mxu1 %v1791_v15  ;;  %2430 = vmatprep.subr.mxu0 %v2328_v24  ;;  %v2297_v51 = vmul.f32 %v3717_v0, %v2294_v54  ;;  %v4348_v8 = vmov 0.0   ;;  %v4350_v15 = vld [vmem:[#allocation40_spill] sm:$0xff] }
 0x2ca   :  { %v1783_v1 = vsel %vm4327_vm2, %v1764_v2, %v4000_v20  ;;  %1933 = vmatpush1.msra.mxu1 %v3403_v42  ;;  %2431 = vmatpush1.msra.mxu0 %v2327_v46  ;;  %v1750_v42 = vsel %vm1748_vm14, %v4004_v43, %v1747_v41  ;;  %v2547_v14 = vsel %vm1431_vm8, 1.0, %v4348_v8 }
 0x2cb   :  { %v1786_v35 = vmul.f32 %v3717_v0, %v1783_v1  ;;  %1934 = vmatprep.subr.mxu1 %v3199_v63  ;;  %2432 = vmatprep.subr.mxu0 %v3887_v28  ;;  %v1760_v32 = vmul.f32 %v3797_v22, %v1750_v42  ;;  %v4362_v0 = vld [vmem:[#allocation29_spill] sm:$0xff] }
 0x2cc   :  { %2433 = vmatpush1.msra.mxu0 %v3884_v3  ;;  %v2234_v55 = vpop.permute.xlu1 %2233  ;;  %1935 = vmatpush1.msra.mxu1 %v1788_v21  ;;  %v2298_v3 = vmul.f32 %v3645_v11, %v2288_v45  ;;  %v4352_v21 = vld [vmem:[#allocation28_spill] sm:$0xff]  ;;  %v4355_v45 = vld [vmem:[#allocation22_spill] sm:$0xff] }
 0x2cd   :  { %v1737_v63 = vpop.permute.xlu0 %1736  ;;  %1936 = vmatprep.subr.mxu1 %v1787_v4  ;;  %2434 = vmatprep.subr.mxu0 %v2302_v29  ;;  %v2236_v34 = vsel %vm1721_vm7, %v4338_v49, %v2234_v55  ;;  %v4354_v29 = vld [vmem:[#allocation19_spill] sm:$0xff] }
 0x2ce   :  { %v1756_v28 = vsel %vm1748_vm14, %v1737_v63, %v4004_v43  ;;  %1937 = vmatpush1.msra.mxu1 %v1786_v35  ;;  %2435 = vmatpush1.msra.mxu0 %v3420_v26  ;;  %v1723_v26 = vsel %vm1721_vm7, %v4008_v7, %v1720_v18  ;;  %v2246_v61 = vmul.f32 %v4334_v10, %v2236_v34  ;;  %vm1884_vm14 = vcmask 924672   ;;  %v4351_v18 = vld [vmem:[#allocation35_spill] sm:$0xff]  ;;  %v4353_v35 = vld [vmem:[#allocation26_spill] sm:$0xff] }
 0x2cf   :  { %v1759_v13 = vmul.f32 %v3864_v38, %v1756_v28  ;;  %1938 = vmatprep.subr.mxu1 %v3676_v56  ;;  %2436 = vmatprep.subr.mxu0 %v2300_v47  ;;  %v1733_v20 = vmul.f32 %v4334_v10, %v1723_v26  ;;  %v4356_v55 = vld [vmem:[#allocation27_spill] sm:$0xff]  ;;  %v4357_v28 = vld [vmem:[#allocation37_spill] sm:$0xff]  ;;  %v4360_v26 = vld [vmem:[#allocation32_spill] sm:$0xff] }
 0x2d0   :  { %2437 = vmatpush1.msra.mxu0 %v2299_v5  ;;  %v2224_v43 = vpop.permute.xlu1 %2223  ;;  %1939 = vmatpush1.msra.mxu1 %v3908_v44  ;;  %v2272_v44 = vmul.f32 %v3797_v22, %v2262_v57  ;;  %v4363_v10 = vld [vmem:[#allocation33_spill] sm:$0xff] }
 0x2d1   :  { %v1710_v50 = vpop.permute.xlu0 %1709  ;;  %1940 = vmatprep.subr.mxu1 %v1760_v32  ;;  %2438 = vmatprep.subr.mxu0 %v2298_v3  ;;  %v2242_v22 = vsel %vm1721_vm7, %v2224_v43, %v4338_v49  ;;  %v4358_v3 = vld [vmem:[#allocation39_spill] sm:$0xff] }
 0x2d2   :  { %v1729_v11 = vsel %vm1721_vm7, %v1710_v50, %v4008_v7  ;;  %1941 = vmatpush1.msra.mxu1 %v1759_v13  ;;  %2439 = vmatpush1.msra.mxu0 %v2297_v51  ;;  %v2271_v7 = vmul.f32 %v3864_v38, %v2268_v17  ;;  %v4342_v38 = vld [vmem:[#allocation24_spill] sm:$0xff]  ;;  %v2245_v48 = vmul.f32 %v4335_v9, %v2242_v22  ;;  %v4359_v13 = vld [vmem:[#allocation31_spill] sm:$0xff]  ;;  %v4361_v50 = vld [vmem:[#allocation30_spill] sm:$0xff]  ;;  %vm4365_vm7 = vcmask 1043456  }
 0x2d3   :  { %v1732_v6 = vmul.f32 %v4335_v9, %v1729_v11  ;;  %1942 = vmatprep.subr.mxu1 %v4336_v39  ;;  %2440 = vmatprep.subr.mxu0 %v4337_v16  ;;  %v4364_v16 = vld [vmem:[#allocation15_spill] sm:$0xff] }
 0x2d4   :  { %2441 = vmatpush1.msra.mxu0 %v4339_v30  ;;  %v1693_v40 = vpop.permute.xlu1 %1692  ;;  %1943 = vmatpush1.msra.mxu1 %v4340_v31 }
 0x2d5   :  { %v1696_v41 = vsel %vm1694_vm12, %v4341_v27, %v1693_v40  ;;  %v1681_v12 = vpop.permute.xlu0 %1680  ;;  %1944 = vmatprep.subr.mxu1 %v1733_v20  ;;  %2442 = vmatprep.subr.mxu0 %v2272_v44 }
 0x2d6   :  { %v1706_v33 = vmul.f32 %v4342_v38, %v1696_v41  ;;  %v1702_v53 = vsel %vm1694_vm12, %v1681_v12, %v4341_v27  ;;  %1945 = vmatpush1.msra.mxu1 %v1732_v6  ;;  %2443 = vmatpush1.msra.mxu0 %v2271_v7 }
 0x2d7   :  { %v1705_v59 = vmul.f32 %v4343_v60, %v1702_v53  ;;  %1946 = vmatprep.subr.mxu1 %v4344_v37  ;;  %2444 = vmatprep.subr.mxu0 %v4345_v52 }
 0x2d8   :  { %2445 = vmatpush1.msra.mxu0 %v4346_v58  ;;  %v2208_v23 = vpop.permute.xlu1 %2207  ;;  %1947 = vmatpush1.msra.mxu1 %v4347_v19 }
 0x2d9   :  { %v2210_v25 = vsel %vm1694_vm12, %v4349_v36, %v2208_v23  ;;  %v1883_v46 = vpop.permute.xlu0 %1882  ;;  %1948 = vmatprep.subr.mxu1 %v1706_v33  ;;  %2446 = vmatprep.subr.mxu0 %v2246_v61 }
 0x2da   :  { %v2220_v24 = vmul.f32 %v4342_v38, %v2210_v25  ;;  %v1886_v62 = vsel %vm1884_vm14, %v4350_v15, %v1883_v46  ;;  %v1899_v2 = vsel %vm1897_vm6, %v1883_v46, %v4351_v18  ;;  %1949 = vmatpush1.msra.mxu1 %v1705_v59  ;;  %2447 = vmatpush1.msra.mxu0 %v2245_v48 }
 0x2db   :  { %v1902_v1 = vmul.f32 %v2547_v14, %v1886_v62  ;;  %v1903_v4 = vmul.f32 %v4352_v21, %v1899_v2  ;;  %1950 = vmatprep.subr.mxu1 %v4353_v35  ;;  %2448 = vmatprep.subr.mxu0 %v4354_v29 }
 0x2dc   :  { %2449 = vmatpush1.msra.mxu0 %v4355_v45  ;;  %v2196_v42 = vpop.permute.xlu1 %2195  ;;  %1951 = vmatpush1.msra.mxu1 %v4356_v55 }
 0x2dd   :  { %v2216_v54 = vsel %vm1694_vm12, %v2196_v42, %v4349_v36  ;;  %v2388_v63 = vpop.permute.xlu0 %2387  ;;  %1980 = vmatprep.subr.mxu1 %v1903_v4  ;;  %2450 = vmatprep.subr.mxu0 %v2220_v24  ;;  %vm2008_vm12 = vmor %vm2007_vm11, %vm4365_vm7 }
 0x2de   :  { %v2219_v47 = vmul.f32 %v4343_v60, %v2216_v54  ;;  %v2402_v5 = vsel %vm1897_vm6, %v2388_v63, %v4357_v28  ;;  %1981 = vmatpush2.msra.mxu1 %v1902_v1  ;;  %v2390_v32 = vsel %vm1884_vm14, %v4358_v3, %v2388_v63 }
 0x2df   :  { %1982 = vmatprep.subr.mxu1 %v4359_v13  ;;  %v2406_v57 = vmul.f32 %v4352_v21, %v2402_v5  ;;  %v2405_v11 = vmul.f32 %v2547_v14, %v2390_v32 }
 0x2e0   :  { %2451 = vmatpush1.msra.mxu0 %v2219_v47  ;;  %v2396_v51 = vpop.permute.xlu1 %2395 }
 0x2e1   :  { %v2401_v43 = vsel %vm1897_vm6, %v4360_v26, %v2396_v51  ;;  %v1877_v17 = vpop.permute.xlu0 %1876  ;;  %2452 = vmatprep.subr.mxu0 %v4361_v50 }
 0x2e2   :  { %v2404_v56 = vmul.f32 %v4352_v21, %v2401_v43  ;;  %v1885_v44 = vsel %vm1884_vm14, %v1877_v17, %v4362_v0  ;;  %2453 = vmatpush1.msra.mxu0 %v4363_v10 }
 0x2e3   :  { %v1900_v20 = vmul.f32 %v2547_v14, %v1885_v44  ;;  %2482 = vmatprep.subr.mxu0 %v2406_v57 }
 0x2e4   :  { %2483 = vmatpush2.msra.mxu0 %v2405_v11  ;;  %v2382_v9 = vpop.permute.xlu1 %2381 }
 0x2e5   :  { %v2389_v6 = vsel %vm1884_vm14, %v2382_v9, %v4360_v26  ;;  %1983 = vmatpush2.msra.mxu1 %v1900_v20  ;;  %2484 = vmatprep.subr.mxu0 %v2404_v56 }
 0x2e6   :  { %v2403_v39 = vmul.f32 %v2547_v14, %v2389_v6  ;;  %1985 = vmatmul.mubr.f32.vlgmr.msra.gmra.mxu1 %v4364_v16 }
 0x2e8   :  { %2485 = vmatpush2.msra.mxu0 %v2403_v39 }
 0x2e9   :  { %2487 = vmatmul.mubr.f32.vlgmr.msra.gmra.mxu0 %v4364_v16 }
 0x2ee   :  { %v1913_v7 = vpop.permute.xlu0 %1912 }
 0x2f1   :  { %v2416_v30 = vpop.permute.xlu1 %2415 }
 0x3a6   :  { %v1986_v49 = vpop.f32.mrf.mxu1 }
 0x3a7   :  { %v1987_v34 = vadd.f32 %v1986_v49, %v1913_v7 }
 0x3a8   :  { %v1988_v40 = vpop.f32.mrf.mxu1 }
 0x3a9   :  { %v2551_v31 = vmul.f32 -1.442695, %v1987_v34  ;;  %v2488_v22 = vpop.f32.mrf.mxu0  ;;  %v1989_v27 = vadd.f32 %v1988_v40, %v1913_v7 }
 0x3aa   :  { %v2489_v41 = vadd.f32 %v2488_v22, %v2416_v30 }
 0x3ab   :  { %2616 = vpow2.f32 %v2551_v31  ;;  %v2552_v12 = vmul.f32 -1.442695, %v1989_v27  ;;  %v2490_v38 = vpop.f32.mrf.mxu0 }
 0x3ac   :  { %v2555_v33 = vmul.f32 -1.442695, %v2489_v41  ;;  %v2491_v53 = vadd.f32 %v2490_v38, %v2416_v30 }
 0x3ad   :  { %2618 = vpow2.f32 %v2552_v12 }
 0x3ae   :  { %2620 = vpow2.f32 %v2555_v33  ;;  %v2556_v61 = vmul.f32 -1.442695, %v2491_v53 }
 0x3b0   :  { %2622 = vpow2.f32 %v2556_v61 }
 0x3b8   :  { %v2617_v60 = vpop.eup %2616 }
 0x3b9   :  { %v1997_v59 = vadd.f32 1.0, %v2617_v60 }
 0x3ba   :  { %v2619_v37 = vpop.eup %2618 }
 0x3bb   :  { %v2621_v52 = vpop.eup %2620  ;;  %2624 = vrcp.f32 %v1997_v59  ;;  %v1998_v48 = vadd.f32 1.0, %v2619_v37 }
 0x3bc   :  { %v2499_v58 = vadd.f32 1.0, %v2621_v52 }
 0x3bd   :  { %v2623_v23 = vpop.eup %2622  ;;  %2626 = vrcp.f32 %v1998_v48 }
 0x3be   :  { %v2500_v19 = vadd.f32 1.0, %v2623_v23  ;;  %2628 = vrcp.f32 %v2499_v58 }
 0x3c0   :  { %2630 = vrcp.f32 %v2500_v19 }
 0x3c8   :  { %v2625_v8 = vpop.eup %2624 }
 0x3ca   :  { %v2627_v14 = vpop.eup %2626 }
 0x3cb   :  { %v2005_v36 = vcombine.low %v2625_v8, %v2627_v14  ;;  %v2629_v25 = vpop.eup %2628 }
 0x3cd   :  { %v2631_v46 = vpop.eup %2630  ;;  %2009 = vst.msk [vmem:[%s4185_s5] sm:$0xff] %vm2008_vm12, %v2005_v36 }
 0x3ce   :  { %v2507_v24 = vcombine.low %v2629_v25, %v2631_v46 }
 0x3d0   :  { %2557 = vst.msk [vmem:[%s4185_s5 + $0x8] sm:$0xff] %vm2008_vm12, %v2507_v24 }
 0x3d1   :  { %2515 = vsyncpa [#allocation4], 1 }
 0x3d2   :  { %2516 = vsyncpa [#allocation6], 1 }

</bundles_post_ra>
